<compile_context>
chip_gen: v6e
topology: v6e:2x2x1
jax: 0.10.0
libtpu: 0.0.40
codegen_flags: <defaults>
</compile_context>

<pallas_src>
import functools

import jax
import jax.numpy as jnp
from jax.experimental import pallas as pl
from jax.experimental.pallas import tpu as pltpu


# ----------------------------------------------------------------------------- helpers
def _elu_plus_one(x):
    # torch.nn.functional.elu(x) + 1  (alpha = 1):
    #   x > 0  ->  x + 1         ==  exp(0) + x
    #   x <= 0 ->  exp(x)        ==  exp(x) + 0
    return jnp.exp(jnp.minimum(x, 0.0)) + jnp.maximum(x, 0.0)


def _pick_block(dim, target, sub):
    """Largest divisor of `dim` <= target that is a multiple of `sub` (then 8), else dim."""
    if dim <= target:
        return dim
    t = int(target) - int(target) % sub
    for cand in range(t, sub - 1, -sub):
        if dim % cand == 0:
            return cand
    t8 = int(target) - int(target) % 8
    for cand in range(t8, 7, -8):
        if dim % cand == 0:
            return cand
    return dim


def _vmem_limit_bytes():
    """min(96 MiB, 3/4 of physical VMEM): ~96 MiB on v5e/v6e, ~48 MiB on v7x."""
    try:
        cap = int(pltpu.get_tpu_info().vmem_capacity_bytes)
    except Exception:  # conservative default that is valid on every generation
        cap = 64 * 1024 * 1024
    return min(96 * 1024 * 1024, (cap * 3) // 4)


# ----------------------------------------------------------------------------- kernel
# Per grid point (n, l, s) every ref is a 2-D tile (batch dim squeezed by the BlockSpec):
#   q_ref : [L_t, H*D]   k_ref : [S_t, H*D]   v_ref : [S_t, H*Dv]   o_ref : [L_t, H*Dv]
#   qm_ref: [L_t, 1]     kvm_ref: [S_t, 1]
#   kv_acc  : [H*D, Dv] f32 scratch (per-head KV matrices stacked along rows)
#   ksum_acc: [H, D]    f32 scratch (per-head K column sums)
# The last grid axis (s) is the reduction over the key/value sequence.
def _linear_attention_kernel(*refs, eps, H, D, Dv, has_qm, has_kvm):
    it = iter(refs)
    q_ref = next(it)
    k_ref = next(it)
    v_ref = next(it)
    qm_ref = next(it) if has_qm else None
    kvm_ref = next(it) if has_kvm else None
    o_ref = next(it)
    kv_acc = next(it)
    ksum_acc = next(it)

    s_idx = pl.program_id(2)

    @pl.when(s_idx == 0)
    def _():
        kv_acc[...] = jnp.zeros_like(kv_acc)
        ksum_acc[...] = jnp.zeros_like(ksum_acc)

    # Feature map / masking on the full folded tile (input dtype straight into the MXU).
    k = _elu_plus_one(k_ref[...])
    v = v_ref[...]
    if has_kvm:
        kvm = kvm_ref[...]                       # [S_t, 1]
        k = k * kvm
        v = v * kvm

    # Static unrolled per-head accumulation.
    for h in range(H):
        k_h = k[:, h * D:(h + 1) * D]            # [S_t, D]
        v_h = v[:, h * Dv:(h + 1) * Dv]          # [S_t, Dv]
        # KV_h[d, e] += sum_s K[s, d] * V[s, e]  -- MXU, f32 accumulation.
        kv_acc[h * D:(h + 1) * D, :] = kv_acc[h * D:(h + 1) * D, :] + jax.lax.dot_general(
            k_h, v_h, (((0,), (0,)), ((), ())), preferred_element_type=jnp.float32
        )
        # Ksum_h[d] += sum_s K[s, d]   (upcast fused into the reduction)
        ksum_acc[h:h + 1, :] = ksum_acc[h:h + 1, :] + jnp.sum(
            k_h, axis=0, keepdims=True, dtype=jnp.float32
        )

    @pl.when(s_idx == pl.num_programs(2) - 1)
    def _():
        q = _elu_plus_one(q_ref[...])
        if has_qm:
            q = q * qm_ref[...]                  # [L_t, 1] broadcast
        for h in range(H):
            q_h = q[:, h * D:(h + 1) * D].astype(jnp.float32)            # [L_t, D]
            denom = jnp.sum(q_h * ksum_acc[h:h + 1, :], axis=-1, keepdims=True) + eps
            # EUP approximate reciprocal + one Newton step -> ~f32 accuracy, off the VPU.
            z = pl.reciprocal(denom, approx=True)
            z = z * (2.0 - denom * z)
            out_h = jnp.dot(
                q_h, kv_acc[h * D:(h + 1) * D, :], preferred_element_type=jnp.float32
            ) * z
            o_ref[:, h * Dv:(h + 1) * Dv] = out_h.astype(o_ref.dtype)


# ----------------------------------------------------------------------------- wrapper
def linear_attention(
    queries, keys, values, q_mask=None, kv_mask=None, eps=1e-6, l_block=None, s_block=None
):
    """queries: [N, L, H, D]; keys: [N, S, H, D]; values: [N, S, H, Dv];
    q_mask: [N, L]; kv_mask: [N, S].  Returns [N, L, H, Dv] (same semantics as PyTorch)."""
    N, L, H, D = queries.shape
    _, S, _, Dv = values.shape
    dt = queries.dtype
    itemsize = jnp.dtype(dt).itemsize
    sub = max(8, 32 // itemsize)                 # sublane packing: 8 f32, 16 bf16, 32 int8

    HD, HDv = H * D, H * Dv

    # Fold heads into the last (lane) dim: free reshape of contiguous trailing dims.
    q2 = queries.reshape(N, L, HD)
    k2 = keys.reshape(N, S, HD)
    v2 = values.reshape(N, S, HDv)

    # --- VMEM budget & tile sizes -------------------------------------------------
    vmem_limit = _vmem_limit_bytes()
    scratch_bytes = (HD * Dv + H * D) * 4
    avail = max(vmem_limit - scratch_bytes - (6 << 20), 4 << 20)
    per_stream = avail // 4                      # (q+o) and (k+v) streams, double-buffered
    row_bytes = (HD + HDv) * itemsize

    def pick(dim, override, name):
        if override is not None:
            t = int(override)
            if dim % t:
                raise ValueError(f"{name} must divide the sequence dim, got {t}/{dim}")
            return t
        return _pick_block(dim, max(sub, per_stream // max(row_bytes, 1)), sub)

    # Prefer L_t == L (no K/V re-read multiplier); tile only if it would not fit VMEM.
    L_t = pick(L, l_block, "l_block")
    S_t = pick(S, s_block, "s_block")
    # TODO(synk): on v7x (2 TensorCores), if N == 1 and L fits a single tile, splitting L
    # into 2 parallel blocks would feed both cores at the cost of re-reading K/V once.

    has_qm = q_mask is not None
    has_kvm = kv_mask is not None

    grid = (N, L // L_t, S // S_t)

    in_specs = [
        pl.BlockSpec((None, L_t, HD), lambda n, l, s: (n, l, 0)),
        pl.BlockSpec((None, S_t, HD), lambda n, l, s: (n, s, 0)),
        pl.BlockSpec((None, S_t, HDv), lambda n, l, s: (n, s, 0)),
    ]
    inputs = [q2, k2, v2]
    if has_qm:
        inputs.append(q_mask.astype(dt).reshape(N, L, 1))
        in_specs.append(pl.BlockSpec((None, L_t, 1), lambda n, l, s: (n, l, 0)))
    if has_kvm:
        inputs.append(kv_mask.astype(dt).reshape(N, S, 1))
        in_specs.append(pl.BlockSpec((None, S_t, 1), lambda n, l, s: (n, s, 0)))

    out_spec = pl.BlockSpec((None, L_t, HDv), lambda n, l, s: (n, l, 0))

    kernel = functools.partial(
        _linear_attention_kernel,
        eps=float(eps), H=H, D=D, Dv=Dv, has_qm=has_qm, has_kvm=has_kvm,
    )

    out = pl.pallas_call(
        kernel,
        out_shape=jax.ShapeDtypeStruct((N, L, HDv), dt),
        grid_spec=pltpu.PrefetchScalarGridSpec(
            num_scalar_prefetch=0,
            grid=grid,
            in_specs=in_specs,
            out_specs=out_spec,
            scratch_shapes=[
                pltpu.VMEM((HD, Dv), jnp.float32),   # per-head KV accumulators (stacked)
                pltpu.VMEM((H, D), jnp.float32),     # per-head K column-sum accumulators
            ],
        ),
        compiler_params=pltpu.CompilerParams(
            dimension_semantics=("parallel", "parallel", "arbitrary"),
            vmem_limit_bytes=int(vmem_limit),
        ),
    )(*inputs)

    return out.reshape(N, L, H, Dv)


# --------------------------------------------------------------------------- reference
def _reference(queries, keys, values, q_mask=None, kv_mask=None, eps=1e-6):
    """Pure-JAX mirror of the PyTorch forward, for verification."""
    def elu1(x):
        return jnp.where(x > 0, x + 1.0, jnp.exp(jnp.minimum(x, 0.0)))
    Q = elu1(queries)
    K = elu1(keys)
    if q_mask is not None:
        Q = Q * q_mask[:, :, None, None]
    if kv_mask is not None:
        K = K * kv_mask[:, :, None, None]
        values = values * kv_mask[:, :, None, None]
    v_length = values.shape[1]
    values = values / v_length
    KV = jnp.einsum("nshd,nshv->nhdv", K, values)
    Z = 1.0 / (jnp.einsum("nlhd,nhd->nlh", Q, K.sum(axis=1)) + eps)
    return jnp.einsum("nlhd,nhdv,nlh->nlhv", Q, KV, Z) * v_length


if __name__ == "__main__":
    key = jax.random.PRNGKey(0)
    kq, kk, kv_, km1, km2 = jax.random.split(key, 5)

    N, L, S, H, D = 2, 16, 16, 4, 32
    queries = jax.random.normal(kq, (N, L, H, D), dtype=jnp.float32)
    keys = jax.random.normal(kk, (N, S, H, D), dtype=jnp.float32)
    values = jax.random.normal(kv_, (N, S, H, D), dtype=jnp.float32)

    # 1) No-mask path, single (L, S) tile per batch element.
    out = jax.block_until_ready(linear_attention(queries, keys, values))
    ref = _reference(queries, keys, values)
    assert out.shape == (N, L, H, D)
    assert jnp.allclose(out, ref, atol=5e-4, rtol=5e-4)

    # 2) No-mask path with forced L/S tiling (exercises accumulator init/finalize).
    out_t = jax.block_until_ready(
        linear_attention(queries, keys, values, l_block=8, s_block=8)
    )
    assert jnp.allclose(out_t, ref, atol=5e-4, rtol=5e-4)

    # 3) Both masks (tiled).
    q_mask = (jax.random.uniform(km1, (N, L)) > 0.3).astype(jnp.float32)
    kv_mask = (jax.random.uniform(km2, (N, S)) > 0.3).astype(jnp.float32)
    out_m = jax.block_until_ready(
        linear_attention(
            queries, keys, values, q_mask=q_mask, kv_mask=kv_mask, l_block=8, s_block=8
        )
    )
    ref_m = _reference(queries, keys, values, q_mask=q_mask, kv_mask=kv_mask)
    assert jnp.allclose(out_m, ref_m, atol=5e-4, rtol=5e-4)

    # 4) Single-mask specializations (kv-only and q-only variants).
    out_kv = jax.block_until_ready(linear_attention(queries, keys, values, kv_mask=kv_mask))
    assert jnp.allclose(out_kv, _reference(queries, keys, values, kv_mask=kv_mask),
                        atol=5e-4, rtol=5e-4)
    out_q = jax.block_until_ready(linear_attention(queries, keys, values, q_mask=q_mask))
    assert jnp.allclose(out_q, _reference(queries, keys, values, q_mask=q_mask),
                        atol=5e-4, rtol=5e-4)

    print("KERNEL_OK")
</pallas_src>

<mosaic_0001>
module attributes {stable_mosaic.version = 11 : i64} {
  func.func @_linear_attention_kernel(%arg0: i32, %arg1: i32, %arg2: i32, %arg3: memref<1x16x128xf32, #tpu.memory_space<vmem>>, %arg4: memref<1x16x128xf32, #tpu.memory_space<vmem>>, %arg5: memref<1x16x128xf32, #tpu.memory_space<vmem>>, %arg6: memref<1x16x128xf32, #tpu.memory_space<vmem>>, %arg7: memref<128x32xf32, #tpu.memory_space<vmem>>, %arg8: memref<4x32xf32, #tpu.memory_space<vmem>>) attributes {dimension_semantics = [#tpu.dimension_semantics<parallel>, #tpu.dimension_semantics<parallel>, #tpu.dimension_semantics<arbitrary>], iteration_bounds = array<i64: 2, 1, 1>, scalar_prefetch = 0 : i64, scratch_operands = 2 : i64, tpu.core_type = #tpu.core_type<tc>, window_params = [{transform_indices = @transform_0, window_bounds = array<i64: 1, 16, 128>}, {transform_indices = @transform_1, window_bounds = array<i64: 1, 16, 128>}, {transform_indices = @transform_2, window_bounds = array<i64: 1, 16, 128>}, {transform_indices = @transform_3, window_bounds = array<i64: 1, 16, 128>}]} {
    %c0_i32 = arith.constant 0 : i32
    %0 = arith.cmpi eq, %arg2, %c0_i32 : i32
    %1 = arith.extui %0 : i1 to i32
    %c0_i32_0 = arith.constant 0 : i32
    %2 = arith.cmpi ne, %1, %c0_i32_0 : i32
    scf.if %2 {
      %cst_43 = arith.constant 0.000000e+00 : f32
      %60 = vector.broadcast %cst_43 : f32 to vector<128x32xf32>
      %c0_44 = arith.constant 0 : index
      %c0_45 = arith.constant 0 : index
      %61 = vector.load %arg7[%c0_44, %c0_45] : memref<128x32xf32, #tpu.memory_space<vmem>>, vector<128x32xf32>
      tpu.vector_store %arg7[%c0_44, %c0_45], %60 {strides = array<i32>} : memref<128x32xf32, #tpu.memory_space<vmem>>, vector<128x32xf32>,
      %cst_46 = arith.constant 0.000000e+00 : f32
      %62 = vector.broadcast %cst_46 : f32 to vector<4x32xf32>
      %c0_47 = arith.constant 0 : index
      %c0_48 = arith.constant 0 : index
      %63 = vector.load %arg8[%c0_47, %c0_48] : memref<4x32xf32, #tpu.memory_space<vmem>>, vector<4x32xf32>
      tpu.vector_store %arg8[%c0_47, %c0_48], %62 {strides = array<i32>} : memref<4x32xf32, #tpu.memory_space<vmem>>, vector<4x32xf32>,
    } else {
    }
    %c0 = arith.constant 0 : index
    %c0_1 = arith.constant 0 : index
    %c0_2 = arith.constant 0 : index
    %3 = vector.load %arg4[%c0, %c0_1, %c0_2] : memref<1x16x128xf32, #tpu.memory_space<vmem>>, vector<1x16x128xf32>
    %4 = vector.shape_cast %3 : vector<1x16x128xf32> to vector<16x128xf32>
    %cst = arith.constant 0.000000e+00 : f32
    %5 = vector.broadcast %cst : f32 to vector<16x128xf32>
    %6 = arith.minimumf %4, %5 : vector<16x128xf32>
    %7 = math.exp %6 : vector<16x128xf32>
    %cst_3 = arith.constant 0.000000e+00 : f32
    %8 = vector.broadcast %cst_3 : f32 to vector<16x128xf32>
    %9 = arith.maximumf %4, %8 : vector<16x128xf32>
    %10 = arith.addf %7, %9 : vector<16x128xf32>
    %c0_4 = arith.constant 0 : index
    %c0_5 = arith.constant 0 : index
    %c0_6 = arith.constant 0 : index
    %11 = vector.load %arg5[%c0_4, %c0_5, %c0_6] : memref<1x16x128xf32, #tpu.memory_space<vmem>>, vector<1x16x128xf32>
    %12 = vector.shape_cast %11 : vector<1x16x128xf32> to vector<16x128xf32>
    %13 = vector.extract_strided_slice %10 {offsets = [0, 0], sizes = [16, 32], strides = [1, 1]} : vector<16x128xf32> to vector<16x32xf32>
    %14 = vector.extract_strided_slice %12 {offsets = [0, 0], sizes = [16, 32], strides = [1, 1]} : vector<16x128xf32> to vector<16x32xf32>
    %c0_7 = arith.constant 0 : index
    %c0_8 = arith.constant 0 : index
    %15 = vector.load %arg7[%c0_7, %c0_8] : memref<128x32xf32, #tpu.memory_space<vmem>>, vector<32x32xf32>
    %cst_9 = arith.constant dense<0.000000e+00> : vector<32x32xf32>
    %16 = tpu.matmul %13, %14, %cst_9 {dimension_numbers = #tpu.dot_dimension_numbers<[0], [0], [1], [1], [0, 1, 1, 1], [], []>} : vector<16x32xf32>, vector<16x32xf32>, vector<32x32xf32> -> vector<32x32xf32>
    %17 = arith.addf %15, %16 : vector<32x32xf32>
    %c0_10 = arith.constant 0 : index
    %c0_11 = arith.constant 0 : index
    %18 = vector.load %arg7[%c0_10, %c0_11] : memref<128x32xf32, #tpu.memory_space<vmem>>, vector<32x32xf32>
    tpu.vector_store %arg7[%c0_10, %c0_11], %17 {strides = array<i32>} : memref<128x32xf32, #tpu.memory_space<vmem>>, vector<32x32xf32>,
    %c0_12 = arith.constant 0 : index
    %c0_13 = arith.constant 0 : index
    %19 = vector.load %arg8[%c0_12, %c0_13] : memref<4x32xf32, #tpu.memory_space<vmem>>, vector<1x32xf32>
    %cst_14 = arith.constant dense<0.000000e+00> : vector<32xf32>
    %20 = vector.multi_reduction <add>, %13, %cst_14 [0] : vector<16x32xf32> to vector<32xf32>
    %21 = vector.shape_cast %20 : vector<32xf32> to vector<1x32xf32>
    %22 = arith.addf %19, %21 : vector<1x32xf32>
    %c0_15 = arith.constant 0 : index
    %c0_16 = arith.constant 0 : index
    %23 = vector.load %arg8[%c0_15, %c0_16] : memref<4x32xf32, #tpu.memory_space<vmem>>, vector<1x32xf32>
    tpu.vector_store %arg8[%c0_15, %c0_16], %22 {strides = array<i32>} : memref<4x32xf32, #tpu.memory_space<vmem>>, vector<1x32xf32>,
    %24 = vector.extract_strided_slice %10 {offsets = [0, 32], sizes = [16, 32], strides = [1, 1]} : vector<16x128xf32> to vector<16x32xf32>
    %25 = vector.extract_strided_slice %12 {offsets = [0, 32], sizes = [16, 32], strides = [1, 1]} : vector<16x128xf32> to vector<16x32xf32>
    %c32 = arith.constant 32 : index
    %c0_17 = arith.constant 0 : index
    %26 = vector.load %arg7[%c32, %c0_17] : memref<128x32xf32, #tpu.memory_space<vmem>>, vector<32x32xf32>
    %cst_18 = arith.constant dense<0.000000e+00> : vector<32x32xf32>
    %27 = tpu.matmul %24, %25, %cst_18 {dimension_numbers = #tpu.dot_dimension_numbers<[0], [0], [1], [1], [0, 1, 1, 1], [], []>} : vector<16x32xf32>, vector<16x32xf32>, vector<32x32xf32> -> vector<32x32xf32>
    %28 = arith.addf %26, %27 : vector<32x32xf32>
    %c32_19 = arith.constant 32 : index
    %c0_20 = arith.constant 0 : index
    %29 = vector.load %arg7[%c32_19, %c0_20] : memref<128x32xf32, #tpu.memory_space<vmem>>, vector<32x32xf32>
    tpu.vector_store %arg7[%c32_19, %c0_20], %28 {strides = array<i32>} : memref<128x32xf32, #tpu.memory_space<vmem>>, vector<32x32xf32>,
    %c1 = arith.constant 1 : index
    %c0_21 = arith.constant 0 : index
    %30 = vector.load %arg8[%c1, %c0_21] : memref<4x32xf32, #tpu.memory_space<vmem>>, vector<1x32xf32>
    %cst_22 = arith.constant dense<0.000000e+00> : vector<32xf32>
    %31 = vector.multi_reduction <add>, %24, %cst_22 [0] : vector<16x32xf32> to vector<32xf32>
    %32 = vector.shape_cast %31 : vector<32xf32> to vector<1x32xf32>
    %33 = arith.addf %30, %32 : vector<1x32xf32>
    %c1_23 = arith.constant 1 : index
    %c0_24 = arith.constant 0 : index
    %34 = vector.load %arg8[%c1_23, %c0_24] : memref<4x32xf32, #tpu.memory_space<vmem>>, vector<1x32xf32>
    tpu.vector_store %arg8[%c1_23, %c0_24], %33 {strides = array<i32>} : memref<4x32xf32, #tpu.memory_space<vmem>>, vector<1x32xf32>,
    %35 = vector.extract_strided_slice %10 {offsets = [0, 64], sizes = [16, 32], strides = [1, 1]} : vector<16x128xf32> to vector<16x32xf32>
    %36 = vector.extract_strided_slice %12 {offsets = [0, 64], sizes = [16, 32], strides = [1, 1]} : vector<16x128xf32> to vector<16x32xf32>
    %c64 = arith.constant 64 : index
    %c0_25 = arith.constant 0 : index
    %37 = vector.load %arg7[%c64, %c0_25] : memref<128x32xf32, #tpu.memory_space<vmem>>, vector<32x32xf32>
    %cst_26 = arith.constant dense<0.000000e+00> : vector<32x32xf32>
    %38 = tpu.matmul %35, %36, %cst_26 {dimension_numbers = #tpu.dot_dimension_numbers<[0], [0], [1], [1], [0, 1, 1, 1], [], []>} : vector<16x32xf32>, vector<16x32xf32>, vector<32x32xf32> -> vector<32x32xf32>
    %39 = arith.addf %37, %38 : vector<32x32xf32>
    %c64_27 = arith.constant 64 : index
    %c0_28 = arith.constant 0 : index
    %40 = vector.load %arg7[%c64_27, %c0_28] : memref<128x32xf32, #tpu.memory_space<vmem>>, vector<32x32xf32>
    tpu.vector_store %arg7[%c64_27, %c0_28], %39 {strides = array<i32>} : memref<128x32xf32, #tpu.memory_space<vmem>>, vector<32x32xf32>,
    %c2 = arith.constant 2 : index
    %c0_29 = arith.constant 0 : index
    %41 = vector.load %arg8[%c2, %c0_29] : memref<4x32xf32, #tpu.memory_space<vmem>>, vector<1x32xf32>
    %cst_30 = arith.constant dense<0.000000e+00> : vector<32xf32>
    %42 = vector.multi_reduction <add>, %35, %cst_30 [0] : vector<16x32xf32> to vector<32xf32>
    %43 = vector.shape_cast %42 : vector<32xf32> to vector<1x32xf32>
    %44 = arith.addf %41, %43 : vector<1x32xf32>
    %c2_31 = arith.constant 2 : index
    %c0_32 = arith.constant 0 : index
    %45 = vector.load %arg8[%c2_31, %c0_32] : memref<4x32xf32, #tpu.memory_space<vmem>>, vector<1x32xf32>
    tpu.vector_store %arg8[%c2_31, %c0_32], %44 {strides = array<i32>} : memref<4x32xf32, #tpu.memory_space<vmem>>, vector<1x32xf32>,
    %46 = vector.extract_strided_slice %10 {offsets = [0, 96], sizes = [16, 32], strides = [1, 1]} : vector<16x128xf32> to vector<16x32xf32>
    %47 = vector.extract_strided_slice %12 {offsets = [0, 96], sizes = [16, 32], strides = [1, 1]} : vector<16x128xf32> to vector<16x32xf32>
    %c96 = arith.constant 96 : index
    %c0_33 = arith.constant 0 : index
    %48 = vector.load %arg7[%c96, %c0_33] : memref<128x32xf32, #tpu.memory_space<vmem>>, vector<32x32xf32>
    %cst_34 = arith.constant dense<0.000000e+00> : vector<32x32xf32>
    %49 = tpu.matmul %46, %47, %cst_34 {dimension_numbers = #tpu.dot_dimension_numbers<[0], [0], [1], [1], [0, 1, 1, 1], [], []>} : vector<16x32xf32>, vector<16x32xf32>, vector<32x32xf32> -> vector<32x32xf32>
    %50 = arith.addf %48, %49 : vector<32x32xf32>
    %c96_35 = arith.constant 96 : index
    %c0_36 = arith.constant 0 : index
    %51 = vector.load %arg7[%c96_35, %c0_36] : memref<128x32xf32, #tpu.memory_space<vmem>>, vector<32x32xf32>
    tpu.vector_store %arg7[%c96_35, %c0_36], %50 {strides = array<i32>} : memref<128x32xf32, #tpu.memory_space<vmem>>, vector<32x32xf32>,
    %c3 = arith.constant 3 : index
    %c0_37 = arith.constant 0 : index
    %52 = vector.load %arg8[%c3, %c0_37] : memref<4x32xf32, #tpu.memory_space<vmem>>, vector<1x32xf32>
    %cst_38 = arith.constant dense<0.000000e+00> : vector<32xf32>
    %53 = vector.multi_reduction <add>, %46, %cst_38 [0] : vector<16x32xf32> to vector<32xf32>
    %54 = vector.shape_cast %53 : vector<32xf32> to vector<1x32xf32>
    %55 = arith.addf %52, %54 : vector<1x32xf32>
    %c3_39 = arith.constant 3 : index
    %c0_40 = arith.constant 0 : index
    %56 = vector.load %arg8[%c3_39, %c0_40] : memref<4x32xf32, #tpu.memory_space<vmem>>, vector<1x32xf32>
    tpu.vector_store %arg8[%c3_39, %c0_40], %55 {strides = array<i32>} : memref<4x32xf32, #tpu.memory_space<vmem>>, vector<1x32xf32>,
    %c0_i32_41 = arith.constant 0 : i32
    %57 = arith.cmpi eq, %arg2, %c0_i32_41 : i32
    %58 = arith.extui %57 : i1 to i32
    %c0_i32_42 = arith.constant 0 : i32
    %59 = arith.cmpi ne, %58, %c0_i32_42 : i32
    scf.if %59 {
      %c0_43 = arith.constant 0 : index
      %c0_44 = arith.constant 0 : index
      %c0_45 = arith.constant 0 : index
      %60 = vector.load %arg3[%c0_43, %c0_44, %c0_45] : memref<1x16x128xf32, #tpu.memory_space<vmem>>, vector<1x16x128xf32>
      %61 = vector.shape_cast %60 : vector<1x16x128xf32> to vector<16x128xf32>
      %cst_46 = arith.constant 0.000000e+00 : f32
      %62 = vector.broadcast %cst_46 : f32 to vector<16x128xf32>
      %63 = arith.minimumf %61, %62 : vector<16x128xf32>
      %64 = math.exp %63 : vector<16x128xf32>
      %cst_47 = arith.constant 0.000000e+00 : f32
      %65 = vector.broadcast %cst_47 : f32 to vector<16x128xf32>
      %66 = arith.maximumf %61, %65 : vector<16x128xf32>
      %67 = arith.addf %64, %66 : vector<16x128xf32>
      %68 = vector.extract_strided_slice %67 {offsets = [0, 0], sizes = [16, 32], strides = [1, 1]} : vector<16x128xf32> to vector<16x32xf32>
      %c0_48 = arith.constant 0 : index
      %c0_49 = arith.constant 0 : index
      %69 = vector.load %arg8[%c0_48, %c0_49] : memref<4x32xf32, #tpu.memory_space<vmem>>, vector<1x32xf32>
      %70 = vector.broadcast %69 : vector<1x32xf32> to vector<16x32xf32>
      %71 = arith.mulf %68, %70 : vector<16x32xf32>
      %cst_50 = arith.constant dense<0.000000e+00> : vector<16xf32>
      %72 = vector.multi_reduction <add>, %71, %cst_50 [1] : vector<16x32xf32> to vector<16xf32>
      %73 = vector.shape_cast %72 : vector<16xf32> to vector<16x1xf32>
      %cst_51 = arith.constant 9.99999997E-7 : f32
      %74 = vector.broadcast %cst_51 : f32 to vector<16x1xf32>
      %75 = arith.addf %73, %74 : vector<16x1xf32>
      %76 = tpu.reciprocal %75 {approx = true} : vector<16x1xf32> -> vector<16x1xf32>
      %77 = arith.mulf %75, %76 : vector<16x1xf32>
      %cst_52 = arith.constant 2.000000e+00 : f32
      %78 = vector.broadcast %cst_52 : f32 to vector<16x1xf32>
      %79 = arith.subf %78, %77 : vector<16x1xf32>
      %80 = arith.mulf %76, %79 : vector<16x1xf32>
      %c0_53 = arith.constant 0 : index
      %c0_54 = arith.constant 0 : index
      %81 = vector.load %arg7[%c0_53, %c0_54] : memref<128x32xf32, #tpu.memory_space<vmem>>, vector<32x32xf32>
      %cst_55 = arith.constant dense<0.000000e+00> : vector<16x32xf32>
      %82 = tpu.matmul %68, %81, %cst_55 {dimension_numbers = #tpu.dot_dimension_numbers<[1], [0], [0], [1], [0, 0, 1, 1], [], []>} : vector<16x32xf32>, vector<32x32xf32>, vector<16x32xf32> -> vector<16x32xf32>
      %83 = vector.broadcast %80 : vector<16x1xf32> to vector<16x32xf32>
      %84 = arith.mulf %82, %83 : vector<16x32xf32>
      %c0_56 = arith.constant 0 : index
      %c0_57 = arith.constant 0 : index
      %c0_58 = arith.constant 0 : index
      %85 = vector.load %arg6[%c0_56, %c0_57, %c0_58] : memref<1x16x128xf32, #tpu.memory_space<vmem>>, vector<1x16x32xf32>
      %86 = vector.shape_cast %85 : vector<1x16x32xf32> to vector<16x32xf32>
      %87 = vector.shape_cast %84 : vector<16x32xf32> to vector<1x16x32xf32>
      tpu.vector_store %arg6[%c0_56, %c0_57, %c0_58], %87 {strides = array<i32>} : memref<1x16x128xf32, #tpu.memory_space<vmem>>, vector<1x16x32xf32>,
      %88 = vector.extract_strided_slice %67 {offsets = [0, 32], sizes = [16, 32], strides = [1, 1]} : vector<16x128xf32> to vector<16x32xf32>
      %c1_59 = arith.constant 1 : index
      %c0_60 = arith.constant 0 : index
      %89 = vector.load %arg8[%c1_59, %c0_60] : memref<4x32xf32, #tpu.memory_space<vmem>>, vector<1x32xf32>
      %90 = vector.broadcast %89 : vector<1x32xf32> to vector<16x32xf32>
      %91 = arith.mulf %88, %90 : vector<16x32xf32>
      %cst_61 = arith.constant dense<0.000000e+00> : vector<16xf32>
      %92 = vector.multi_reduction <add>, %91, %cst_61 [1] : vector<16x32xf32> to vector<16xf32>
      %93 = vector.shape_cast %92 : vector<16xf32> to vector<16x1xf32>
      %cst_62 = arith.constant 9.99999997E-7 : f32
      %94 = vector.broadcast %cst_62 : f32 to vector<16x1xf32>
      %95 = arith.addf %93, %94 : vector<16x1xf32>
      %96 = tpu.reciprocal %95 {approx = true} : vector<16x1xf32> -> vector<16x1xf32>
      %97 = arith.mulf %95, %96 : vector<16x1xf32>
      %cst_63 = arith.constant 2.000000e+00 : f32
      %98 = vector.broadcast %cst_63 : f32 to vector<16x1xf32>
      %99 = arith.subf %98, %97 : vector<16x1xf32>
      %100 = arith.mulf %96, %99 : vector<16x1xf32>
      %c32_64 = arith.constant 32 : index
      %c0_65 = arith.constant 0 : index
      %101 = vector.load %arg7[%c32_64, %c0_65] : memref<128x32xf32, #tpu.memory_space<vmem>>, vector<32x32xf32>
      %cst_66 = arith.constant dense<0.000000e+00> : vector<16x32xf32>
      %102 = tpu.matmul %88, %101, %cst_66 {dimension_numbers = #tpu.dot_dimension_numbers<[1], [0], [0], [1], [0, 0, 1, 1], [], []>} : vector<16x32xf32>, vector<32x32xf32>, vector<16x32xf32> -> vector<16x32xf32>
      %103 = vector.broadcast %100 : vector<16x1xf32> to vector<16x32xf32>
      %104 = arith.mulf %102, %103 : vector<16x32xf32>
      %c0_67 = arith.constant 0 : index
      %c0_68 = arith.constant 0 : index
      %c32_69 = arith.constant 32 : index
      %105 = vector.load %arg6[%c0_67, %c0_68, %c32_69] : memref<1x16x128xf32, #tpu.memory_space<vmem>>, vector<1x16x32xf32>
      %106 = vector.shape_cast %105 : vector<1x16x32xf32> to vector<16x32xf32>
      %107 = vector.shape_cast %104 : vector<16x32xf32> to vector<1x16x32xf32>
      tpu.vector_store %arg6[%c0_67, %c0_68, %c32_69], %107 {strides = array<i32>} : memref<1x16x128xf32, #tpu.memory_space<vmem>>, vector<1x16x32xf32>,
      %108 = vector.extract_strided_slice %67 {offsets = [0, 64], sizes = [16, 32], strides = [1, 1]} : vector<16x128xf32> to vector<16x32xf32>
      %c2_70 = arith.constant 2 : index
      %c0_71 = arith.constant 0 : index
      %109 = vector.load %arg8[%c2_70, %c0_71] : memref<4x32xf32, #tpu.memory_space<vmem>>, vector<1x32xf32>
      %110 = vector.broadcast %109 : vector<1x32xf32> to vector<16x32xf32>
      %111 = arith.mulf %108, %110 : vector<16x32xf32>
      %cst_72 = arith.constant dense<0.000000e+00> : vector<16xf32>
      %112 = vector.multi_reduction <add>, %111, %cst_72 [1] : vector<16x32xf32> to vector<16xf32>
      %113 = vector.shape_cast %112 : vector<16xf32> to vector<16x1xf32>
      %cst_73 = arith.constant 9.99999997E-7 : f32
      %114 = vector.broadcast %cst_73 : f32 to vector<16x1xf32>
      %115 = arith.addf %113, %114 : vector<16x1xf32>
      %116 = tpu.reciprocal %115 {approx = true} : vector<16x1xf32> -> vector<16x1xf32>
      %117 = arith.mulf %115, %116 : vector<16x1xf32>
      %cst_74 = arith.constant 2.000000e+00 : f32
      %118 = vector.broadcast %cst_74 : f32 to vector<16x1xf32>
      %119 = arith.subf %118, %117 : vector<16x1xf32>
      %120 = arith.mulf %116, %119 : vector<16x1xf32>
      %c64_75 = arith.constant 64 : index
      %c0_76 = arith.constant 0 : index
      %121 = vector.load %arg7[%c64_75, %c0_76] : memref<128x32xf32, #tpu.memory_space<vmem>>, vector<32x32xf32>
      %cst_77 = arith.constant dense<0.000000e+00> : vector<16x32xf32>
      %122 = tpu.matmul %108, %121, %cst_77 {dimension_numbers = #tpu.dot_dimension_numbers<[1], [0], [0], [1], [0, 0, 1, 1], [], []>} : vector<16x32xf32>, vector<32x32xf32>, vector<16x32xf32> -> vector<16x32xf32>
      %123 = vector.broadcast %120 : vector<16x1xf32> to vector<16x32xf32>
      %124 = arith.mulf %122, %123 : vector<16x32xf32>
      %c0_78 = arith.constant 0 : index
      %c0_79 = arith.constant 0 : index
      %c64_80 = arith.constant 64 : index
      %125 = vector.load %arg6[%c0_78, %c0_79, %c64_80] : memref<1x16x128xf32, #tpu.memory_space<vmem>>, vector<1x16x32xf32>
      %126 = vector.shape_cast %125 : vector<1x16x32xf32> to vector<16x32xf32>
      %127 = vector.shape_cast %124 : vector<16x32xf32> to vector<1x16x32xf32>
      tpu.vector_store %arg6[%c0_78, %c0_79, %c64_80], %127 {strides = array<i32>} : memref<1x16x128xf32, #tpu.memory_space<vmem>>, vector<1x16x32xf32>,
      %128 = vector.extract_strided_slice %67 {offsets = [0, 96], sizes = [16, 32], strides = [1, 1]} : vector<16x128xf32> to vector<16x32xf32>
      %c3_81 = arith.constant 3 : index
      %c0_82 = arith.constant 0 : index
      %129 = vector.load %arg8[%c3_81, %c0_82] : memref<4x32xf32, #tpu.memory_space<vmem>>, vector<1x32xf32>
      %130 = vector.broadcast %129 : vector<1x32xf32> to vector<16x32xf32>
      %131 = arith.mulf %128, %130 : vector<16x32xf32>
      %cst_83 = arith.constant dense<0.000000e+00> : vector<16xf32>
      %132 = vector.multi_reduction <add>, %131, %cst_83 [1] : vector<16x32xf32> to vector<16xf32>
      %133 = vector.shape_cast %132 : vector<16xf32> to vector<16x1xf32>
      %cst_84 = arith.constant 9.99999997E-7 : f32
      %134 = vector.broadcast %cst_84 : f32 to vector<16x1xf32>
      %135 = arith.addf %133, %134 : vector<16x1xf32>
      %136 = tpu.reciprocal %135 {approx = true} : vector<16x1xf32> -> vector<16x1xf32>
      %137 = arith.mulf %135, %136 : vector<16x1xf32>
      %cst_85 = arith.constant 2.000000e+00 : f32
      %138 = vector.broadcast %cst_85 : f32 to vector<16x1xf32>
      %139 = arith.subf %138, %137 : vector<16x1xf32>
      %140 = arith.mulf %136, %139 : vector<16x1xf32>
      %c96_86 = arith.constant 96 : index
      %c0_87 = arith.constant 0 : index
      %141 = vector.load %arg7[%c96_86, %c0_87] : memref<128x32xf32, #tpu.memory_space<vmem>>, vector<32x32xf32>
      %cst_88 = arith.constant dense<0.000000e+00> : vector<16x32xf32>
      %142 = tpu.matmul %128, %141, %cst_88 {dimension_numbers = #tpu.dot_dimension_numbers<[1], [0], [0], [1], [0, 0, 1, 1], [], []>} : vector<16x32xf32>, vector<32x32xf32>, vector<16x32xf32> -> vector<16x32xf32>
      %143 = vector.broadcast %140 : vector<16x1xf32> to vector<16x32xf32>
      %144 = arith.mulf %142, %143 : vector<16x32xf32>
      %c0_89 = arith.constant 0 : index
      %c0_90 = arith.constant 0 : index
      %c96_91 = arith.constant 96 : index
      %145 = vector.load %arg6[%c0_89, %c0_90, %c96_91] : memref<1x16x128xf32, #tpu.memory_space<vmem>>, vector<1x16x32xf32>
      %146 = vector.shape_cast %145 : vector<1x16x32xf32> to vector<16x32xf32>
      %147 = vector.shape_cast %144 : vector<16x32xf32> to vector<1x16x32xf32>
      tpu.vector_store %arg6[%c0_89, %c0_90, %c96_91], %147 {strides = array<i32>} : memref<1x16x128xf32, #tpu.memory_space<vmem>>, vector<1x16x32xf32>,
    } else {
    }
    return
  }
  func.func @transform_0(%arg0: i32, %arg1: i32, %arg2: i32) -> (i32, i32, i32) {
    %c0_i32 = arith.constant 0 : i32
    %c0_i32_0 = arith.constant 0 : i32
    return %arg0, %arg1, %c0_i32 : i32, i32, i32
  }
  func.func @transform_1(%arg0: i32, %arg1: i32, %arg2: i32) -> (i32, i32, i32) {
    %c0_i32 = arith.constant 0 : i32
    %c0_i32_0 = arith.constant 0 : i32
    return %arg0, %arg2, %c0_i32 : i32, i32, i32
  }
  func.func @transform_2(%arg0: i32, %arg1: i32, %arg2: i32) -> (i32, i32, i32) {
    %c0_i32 = arith.constant 0 : i32
    %c0_i32_0 = arith.constant 0 : i32
    return %arg0, %arg2, %c0_i32 : i32, i32, i32
  }
  func.func @transform_3(%arg0: i32, %arg1: i32, %arg2: i32) -> (i32, i32, i32) {
    %c0_i32 = arith.constant 0 : i32
    %c0_i32_0 = arith.constant 0 : i32
    return %arg0, %arg1, %c0_i32 : i32, i32, i32
  }
}

</mosaic_0001>

<bundles_post_ra>
// kernel: tpu_custom_call.1
= control target key start
LH: loop header
LB: loop body
LE: loop exit
PB: predicated region body
PF: predicated region fallthrough
CT: control target
= control target key end

     0   :  { %s2612_s0 = inlined_call_operand.hbm [shape: f32[2,16,128], index: 0, kind: input, shape index: {}]   ;;  %s2613_s1 = inlined_call_operand.hbm [shape: f32[2,16,128], index: 1, kind: input, shape index: {}]   ;;  %s2614_s2 = inlined_call_operand.hbm [shape: f32[2,16,128], index: 2, kind: input, shape index: {}]   ;;  %s2615_s3 = inlined_call_operand.hbm [shape: f32[2,16,128], index: 3, kind: output, shape index: {}]  }
   0x1   :  { %2621 = sst [smem:[#allocation17_spill]] %s2613_s1 }
   0x2   :  { %8 = vsyncpa [#allocation5], 0 }
   0x3   :  { %10 = vsyncpa [#allocation5 + $0x1], 0 }
   0x4   :  { %11 = vsyncpa [#allocation8], 0 }
   0x5   :  { %13 = vsyncpa [#allocation8 + $0x1], 0 }
   0x6   :  { %14 = vsyncpa [#allocation6], 0 }
   0x7   :  { %16 = vsyncpa [#allocation6 + $0x1], 0  ;;  %s2187_s12 = smov 0   ;;  %s2189_s13 = smov 0  }
   0x8   :  { %s2191_s14 = smov 0   ;;  %s2193_s15 = smov 0  }
   0x9   :  { %s2195_s16 = smov 0   ;;  %s2197_s17 = smov 0  }
   0xa LB: > { %2622 = sst [smem:[#allocation14_spill]] %s2149_s16  ;;  %s2218_s18 = sadd.s32 4294967295, %s2153_s17   ;;  %s2153_s17 = sphi %s2197_s17, %s22_s17   ;;  %s2149_s16 = sphi %s2195_s16, %s2637_s16   ;;  %s2145_s15 = sphi %s2193_s15, %s2636_s15   ;;  %s2141_s14 = sphi %s2191_s14, %s2640_s14   ;;  %s2137_s13 = sphi %s2189_s13, %s2639_s13   ;;  %s2133_s12 = sphi %s2187_s12, %s2638_s12  }
   0xb   : > { %s1695_s19 = sadd.s32 4294967294, %s2153_s17   ;;  %s41_s20 = sadd.s32 1, %s2149_s16 }
   0xc   : > { %s50_s21 = sadd.s32 1, %s2141_s14  ;;  %p43_p0 = scmp.ge.s32.totalorder %s41_s20, 2 }
   0xd   : > { %p57_p1 = scmp.ne.s32.totalorder %s2141_s14, %s2137_s13  ;;  %p58_p2 = scmp.eq.s32.totalorder %s2153_s17, 0 }
   0xe   : > { %p63_p3 = scmp.ne.s32.totalorder %s2137_s13, %s2133_s12  ;;  %s2642_s20 = smov (%p43_p0, %s41_s20), 0 }
   0xf   : > { %2623 = sst [smem:[#allocation15_spill]] %s2642_s20  ;;  %p2230_p4 = por %p58_p2, %p57_p1 }
  0x10   : > { %p64_p5 = scmp.eq.s32.totalorder %s2218_s18, 0  ;;  %s45_s23 = ssub.s32 %s2149_s16, %s2642_s20 }
  0x11   : > { %p145_p6 = scmp.eq.s32.totalorder %s2218_s18, 1  ;;  %p48_p7 = scmp.eq.s32.totalorder %s45_s23, 0 }
  0x12   : > { %p2238_p8 = por %p64_p5, %p63_p3  ;;  %p151_p10 = scmp.eq.s32.totalorder %s1695_s19, 1 }
  0x13   : > { %p2242_p9 = por %p145_p6, %p57_p1  ;;  %p1903_p13 = scmp.lt.s32.totalorder %s2153_s17, 2 }
  0x14   : > { %s2247_s26 = scalar_select %p48_p7, %s2141_s14, %s50_s21  }
  0x15   : > { %p2249_p11 = por %p151_p10, %p63_p3  ;;  %s2616_s28 = sand.u32 1, %s2141_s14  }
  0x16   : > { %2627 = sst [smem:[#allocation16_spill]] %s2247_s26  ;;  %s2258_s29 = sshll.u32 %s2616_s28, 4 }
  0x17   : > { %s2261_s30 = sshll.u32 %s2149_s16, 8  ;;  %p2265_p0 = pnand %p1903_p13, %p2230_p4 }
  0x18   : > { %s194_s5 = sand.u32 1, %s2153_s17   ;;  %s2630_s1 = sld [smem:[#allocation17_spill]] }
  0x19   : > { %s198_s9 = scalar_lea.vmem [#allocation7], %s2258_s29  ;;  %p1707_p1 = scmp.ge.s32.totalorder %s2153_s17, 1 }
  0x1a   : > { %s207_s10 = sshll.u32 %s198_s9, 4  ;;  %p238_p2 = scmp.lt.s32.totalorder %s2153_s17, 3  ;;  %s208_s10 = int_to_ptr.vmem [resolvable:$true] %s207_s10 }
  0x1b   : > { %s2277_s11 = scalar_lea.sflag [#allocation8], %s194_s5  ;;  %p1987_p3 = pneg %p2265_p0 }
  0x1c   : > { %s1998_s19 = scalar_lea.vmem %s208_s10, 256  ;;  %s2155_s21 = smov [#allocation7]  }
  0x1d   : > { %p1999_p4 = scmp.ne.s32.totalorder %s208_s10, %s1998_s19  ;;  %s2003_s22 = sshll.u32 %s2155_s21, 4  ;;  %s2004_s22 = int_to_ptr.vmem [resolvable:$false] %s2003_s22 }
  0x1e   : > { %s206_s8 = scalar_lea.hbm %s2630_s1, %s2261_s30  ;;  %s2005_s23 = scalar_lea.vmem %s2004_s22, 512 }
  0x1f   : > { %p2001_p5 = pnand %p1999_p4, %p1987_p3  ;;  %p2006_p7 = scmp.lt.s32.totalorder %s208_s10, %s2004_s22 }
  0x20   : > { %p2007_p10 = scmp.lt.s32.totalorder %s2005_s23, %s1998_s19 }
  0x21   : > { %p2002_p6 = pneg %p2001_p5 }
  0x22   : > { %p2008_p13 = por %p2007_p10, %p2006_p7 }
  0x24   : > { %p2009_p12 = pnand %p2008_p13, %p2002_p6 }
  0x26   : > { %2012 = shalt.err (!%p2009_p12)
}
  0x27   : > { %s2619_s6 = smov 128   ;;  %s2157_s5 = smov 8  }
  0x28   : > { %1895 = dma.hbm_to_vmem [thread:$0]  (!%p2265_p0), %s206_s8, 256, %s208_s10, %s2277_s11, %s2619_s6, %s2619_s6, %s2157_s5  }
  0x29   : > { %p2294_p4 = pnand %p1707_p1, %p238_p2  ;;  %s183_s21 = scalar_lea.hbm %s2612_s0, %s2261_s30 }
  0x2a   : > { %s175_s22 = scalar_lea.vmem [#allocation4], %s2258_s29  ;;  %s229_s20 = scalar_lea.hbm %s2614_s2, %s2261_s30 }
  0x2b   : > { %s184_s23 = sshll.u32 %s175_s22, 4  ;;  %s2632_s16 = sand.u32 1, %s2141_s14   ;;  %s185_s23 = int_to_ptr.vmem [resolvable:$true] %s184_s23 }
  0x2c   : > { %s172_s26 = scalar_lea.sflag [#allocation5], %s2632_s16  ;;  %s2026_s8 = scalar_lea.vmem %s185_s23, 256 }
  0x2d   : > { %p2027_p12 = scmp.ne.s32.totalorder %s185_s23, %s2026_s8  ;;  %s2158_s10 = smov [#allocation4]  }
  0x2e   : > { %s2031_s6 = sshll.u32 %s2158_s10, 4  ;;  %s2032_s6 = int_to_ptr.vmem [resolvable:$false] %s2031_s6 }
  0x2f   : > { %p2029_p1 = pnand %p2027_p12, %p1987_p3  ;;  %s2033_s9 = scalar_lea.vmem %s2032_s6, 512 }
  0x30   : > { %p2034_p5 = scmp.lt.s32.totalorder %s185_s23, %s2032_s6  ;;  %p2035_p6 = scmp.lt.s32.totalorder %s2033_s9, %s2026_s8 }
  0x31   : > { %p2030_p2 = pneg %p2029_p1 }
  0x32   : > { %p2036_p7 = por %p2035_p6, %p2034_p5 }
  0x34   : > { %p2037_p10 = pnand %p2036_p7, %p2030_p2 }
  0x36   : > { %2040 = shalt.err (!%p2037_p10)
}
  0x37   : > { %s2633_s1 = smov 128   ;;  %s221_s16 = scalar_lea.vmem [#allocation9], %s2258_s29 }
  0x38   : > { %1892 = dma.hbm_to_vmem [thread:$0]  (!%p2265_p0), %s183_s21, 256, %s185_s23, %s172_s26, %s2633_s1, %s2633_s1, %s2157_s5  }
  0x39   : > { %s230_s28 = sshll.u32 %s221_s16, 4  ;;  %s2159_s6 = smov [#allocation9]   ;;  %s231_s28 = int_to_ptr.vmem [resolvable:$true] %s230_s28 }
  0x3a   : > { %s2054_s19 = scalar_lea.vmem %s231_s28, 256  ;;  %s2059_s22 = sshll.u32 %s2159_s6, 4  ;;  %s2060_s22 = int_to_ptr.vmem [resolvable:$false] %s2059_s22 }
  0x3b   : > { %p2055_p13 = scmp.ne.s32.totalorder %s231_s28, %s2054_s19  ;;  %s2061_s8 = scalar_lea.vmem %s2060_s22, 512 }
  0x3c   : > { %p2062_p2 = scmp.lt.s32.totalorder %s231_s28, %s2060_s22  ;;  %p2063_p5 = scmp.lt.s32.totalorder %s2061_s8, %s2054_s19 }
  0x3d   : > { %p2057_p12 = pnand %p2055_p13, %p1987_p3 }
  0x3e   : > { %p2064_p6 = por %p2063_p5, %p2062_p2 }
  0x3f   : > { %p2058_p1 = pneg %p2057_p12 }
  0x41   : > { %p2065_p7 = pnand %p2064_p6, %p2058_p1 }
  0x43   : > { %2068 = shalt.err (!%p2065_p7)
}
  0x44   : > { %1898 = dma.hbm_to_vmem [thread:$0]  (!%p2265_p0), %s229_s20, 256, %s231_s28, %s2277_s11, %s2633_s1, %s2633_s1, %s2157_s5  }
  0x45   : > { %242 = sbr.rel (%p2294_p4) target bundleno = 940 (0x3ac), region = 32  ;;  %s2335_s21 = sand.u32 (!%p2294_p4), 1, %s2137_s13  }
  0x46   : > { %s2338_s4 = sshll.u32 (!%p2294_p4), %s2335_s21, 4  ;;  %s245_s23 = scalar_lea.sflag (!%p2294_p4), [#allocation5], %s2335_s21 }
  0x47   : > { %s248_s10 = scalar_lea.vmem (!%p2294_p4), [#allocation4], %s2338_s4 }
  0x4a   : > { %2120 = dma.done.wait (%p2238_p8), %s245_s23, 256  }
  0x4b   : > { %2122 = vsyncadd (%p2238_p8), %s245_s23, 4294967040  ;;  %s253_s20 = sand.u32 1, %s2218_s18   ;;  %s257_s11 = scalar_lea.vmem [#allocation7], %s2338_s4 }
  0x4c   : > { %s254_s30 = scalar_lea.sflag [#allocation8], %s253_s20 }
  0x4d   : > { %2124 = dma.done.wait (%p2238_p8), %s254_s30, 512  }
  0x4e   : > { %2126 = vsyncadd (%p2238_p8), %s254_s30, 4294966784  ;;  %v326_v0 = vld [vmem:[%s257_s11] sm:$0xff]  ;;  %v327_v1 = vld [vmem:[%s257_s11 + $0x8] sm:$0xff]  ;;  %s266_s5 = scalar_lea.vmem [#allocation9], %s2338_s4  ;;  %s2160_s18 = smov 64   ;;  %vm654_vm0 = vcmask 523520  }
  0x4f   : > { %v328_v2 = vmin.f32 %v326_v0, 0.0  ;;  %v329_v3 = vmin.f32 %v327_v1, 0.0  ;;  %v339_v4 = vld [vmem:[%s266_s5 + $0x8] sm:$0xff]  ;;  %v338_v7 = vld [vmem:[%s266_s5] sm:$0xff]  ;;  %v334_v8 = vmax.f32 %v326_v0, 0.0  ;;  %v335_v9 = vmax.f32 %v327_v1, 0.0 }
  0x50   : > { %1797 = vmatprep.subr.mxu0 %v339_v4  ;;  %s2161_s24 = smov 96   ;;  %s2162_s7 = smov 32   ;;  %vm824_vm1 = vcmask 785920   ;;  %vm307_vm2 = vcmask 261120   ;;  %vm324_vm3 = vcmask 257024   ;;  %v2163_v27 = vmov 0.0  }
  0x51   : > { %v330_v5 = vmul.f32 1.442695, %v328_v2  ;;  %v332_v6 = vmul.f32 1.442695, %v329_v3  ;;  %1798 = vmatpush3.msra.mxu0 %v339_v4  ;;  %308 = vst.msk [vmem:[#allocation2] sm:$0xff] %vm307_vm2, %v2163_v27  ;;  %309 = vst.msk [vmem:[#allocation2 + $0x8] sm:$0xff] %vm307_vm2, %v2163_v27 }
  0x52   : > { %1799 = vmatprep.subr.mxu0 %v338_v7  ;;  %310 = vst.msk [vmem:[#allocation2 + $0x10] sm:$0xff] %vm307_vm2, %v2163_v27  ;;  %311 = vst.msk [vmem:[#allocation2 + $0x18] sm:$0xff] %vm307_vm2, %v2163_v27  ;;  %vm994_vm4 = vcmask 1048320   ;;  %v1013_v34 = vld [vmem:[%s248_s10] sm:$0xff]  ;;  %v1014_v39 = vld [vmem:[%s248_s10 + $0x8] sm:$0xff]  ;;  %vm376_vm5 = vcmask 130048  }
  0x53   : > { %1961 = vpow2.f32 %v330_v5  ;;  %1800 = vmatpush3.msra.mxu0 %v338_v7  ;;  %312 = vst.msk [vmem:[#allocation2 + $0x20] sm:$0xff] %vm307_vm2, %v2163_v27  ;;  %313 = vst.msk [vmem:[#allocation2 + $0x28] sm:$0xff] %vm307_vm2, %v2163_v27  ;;  %v1015_v38 = vmin.f32 %v1013_v34, 0.0  ;;  %v1016_v42 = vmin.f32 %v1014_v39, 0.0  ;;  %v1021_v2 = vmax.f32 %v1013_v34, 0.0  ;;  %s2533_s9 = scalar_lea.vmem [#allocation10], %s2338_s4 }
  0x54   : > { %1963 = vpow2.f32 %v332_v6  ;;  %314 = vst.msk [vmem:[#allocation2 + $0x30] sm:$0xff] %vm307_vm2, %v2163_v27  ;;  %315 = vst.msk [vmem:[#allocation2 + $0x38] sm:$0xff] %vm307_vm2, %v2163_v27  ;;  %vm494_vm6 = vcmask 253952   ;;  %s1748_s1 = sshll.u32 %s2145_s15, 8  ;;  %s1555_s16 = sshll.u32 %s2533_s9, 4  ;;  %s2562_s16 = int_to_ptr.vmem [resolvable:$true] %s1555_s16 }
  0x55   : > { %316 = vst.msk [vmem:[#allocation2 + $0x40] sm:$0xff] %vm307_vm2, %v2163_v27  ;;  %317 = vst.msk [vmem:[#allocation2 + $0x48] sm:$0xff] %vm307_vm2, %v2163_v27  ;;  %v1017_v44 = vmul.f32 1.442695, %v1015_v38  ;;  %v1019_v48 = vmul.f32 1.442695, %v1016_v42  ;;  %s2560_s6 = scalar_lea.hbm %s2615_s3, %s1748_s1 }
  0x56   : > { %318 = vst.msk [vmem:[#allocation2 + $0x50] sm:$0xff] %vm307_vm2, %v2163_v27  ;;  %319 = vst.msk [vmem:[#allocation2 + $0x58] sm:$0xff] %vm307_vm2, %v2163_v27  ;;  %s1540_s22 = scalar_lea.sflag [#allocation6], %s2335_s21  ;;  %s2069_s8 = scalar_lea.vmem %s2562_s16, 256 }
  0x57   : > { %320 = vst.msk [vmem:[#allocation2 + $0x60] sm:$0xff] %vm307_vm2, %v2163_v27  ;;  %321 = vst.msk [vmem:[#allocation2 + $0x68] sm:$0xff] %vm307_vm2, %v2163_v27  ;;  %1965 = vpow2.f32 %v1017_v44  ;;  %p2070_p8 = scmp.ne.s32.totalorder %s2562_s16, %s2069_s8  ;;  %s2164_s15 = smov [#allocation10]  }
  0x58   : > { %322 = vst.msk [vmem:[#allocation2 + $0x70] sm:$0xff] %vm307_vm2, %v2163_v27  ;;  %323 = vst.msk [vmem:[#allocation2 + $0x78] sm:$0xff] %vm307_vm2, %v2163_v27  ;;  %1967 = vpow2.f32 %v1019_v48  ;;  %s2073_s26 = sshll.u32 %s2164_s15, 4  ;;  %s2074_s26 = int_to_ptr.vmem [resolvable:$false] %s2073_s26 }
  0x59   : > { %325 = vst.msk [vmem:[#allocation3] sm:$0xf] %vm324_vm3, %v2163_v27  ;;  %p2071_p0 = pnand %p2070_p8, %p2242_p9  ;;  %s2075_s29 = scalar_lea.vmem %s2074_s26, 512 }
  0x5a   : > { %p2076_p4 = scmp.lt.s32.totalorder %s2562_s16, %s2074_s26  ;;  %p2077_p10 = scmp.lt.s32.totalorder %s2075_s29, %s2069_s8 }
  0x5b   : > { %p2072_p3 = pneg %p2071_p0 }
  0x5c   : > { %p2078_p13 = por %p2077_p10, %p2076_p4 }
  0x5e   : > { %p2079_p12 = pnand %p2078_p13, %p2072_p3 }
  0x60   : > { %v1962_v10 = vpop.eup %1961  ;;  %v483_v5 = vld [vmem:[#allocation3] sm:$0x1] }
  0x61   : > { %v1964_v11 = vpop.eup %1963  ;;  %v2353_v12 = vadd.f32 %v1962_v10, %v334_v8  ;;  %v1022_v8 = vmax.f32 %v1014_v39, 0.0 }
  0x62   : > { %v2359_v13 = vadd.f32 %v1964_v11, %v335_v9 }
  0x63   : > { %674 = vrot.lane.b32.xlu1 %v2353_v12, %s2160_s18  ;;  %502 = vrot.lane.b32.xlu0 %v2353_v12, %s2161_s24  ;;  %v655_v25 = vsel %vm654_vm0, %v2353_v12, 0.0  ;;  %v825_v28 = vsel %vm824_vm1, %v2353_v12, 0.0  ;;  %v995_v32 = vsel %vm994_vm4, %v2353_v12, 0.0  ;;  %v484_v50 = vsel %vm307_vm2, %v2353_v12, 0.0 }
  0x64   : > { %v656_v26 = vsel %vm654_vm0, %v2359_v13, 0.0  ;;  %v826_v29 = vsel %vm824_vm1, %v2359_v13, 0.0  ;;  %v996_v33 = vsel %vm994_vm4, %v2359_v13, 0.0  ;;  %v485_v47 = vsel %vm307_vm2, %v2359_v13, 0.0 }
  0x65   : > { %v657_v30 = vadd.f32 %v656_v26, %v655_v25  ;;  %v827_v31 = vadd.f32 %v826_v29, %v825_v28  ;;  %v997_v36 = vadd.f32 %v996_v33, %v995_v32  ;;  %v486_v51 = vadd.f32 %v485_v47, %v484_v50  ;;  %v653_v29 = vld [vmem:[#allocation3 + $0x1] sm:$0x1] }
  0x66   : > { %v340_v47 = vld [vmem:[#allocation2] sm:$0xff] }
  0x67   : > { %844 = vrot.lane.b32.xlu1 %v2353_v12, %s2162_s7  ;;  %504 = vrot.lane.b32.xlu0 %v2359_v13, %s2161_s24  ;;  %v658_v35 = vrot.slane %v657_v30, 4  ;;  %v828_v37 = vrot.slane %v827_v31, 4  ;;  %v998_v41 = vrot.slane %v997_v36, 4  ;;  %v487_v55 = vrot.slane %v486_v51, 4 }
  0x69   : > { %v659_v40 = vadd.f32 %v658_v35, %v657_v30  ;;  %v829_v43 = vadd.f32 %v828_v37, %v827_v31  ;;  %v999_v46 = vadd.f32 %v998_v41, %v997_v36  ;;  %v488_v56 = vadd.f32 %v487_v55, %v486_v51  ;;  %v823_v30 = vld [vmem:[#allocation3 + $0x2] sm:$0x1]  ;;  %v993_v35 = vld [vmem:[#allocation3 + $0x3] sm:$0x1]  ;;  %v343_v51 = vld [vmem:[#allocation2 + $0x18] sm:$0xff] }
  0x6b   : > { %542 = vrot.lane.b32.xlu1 %v338_v7, %s2161_s24  ;;  %676 = vrot.lane.b32.xlu0 %v2359_v13, %s2160_s18  ;;  %v660_v45 = vrot.slane %v659_v40, 2  ;;  %v830_v49 = vrot.slane %v829_v43, 2  ;;  %v1000_v53 = vrot.slane %v999_v46, 2  ;;  %v489_v60 = vrot.slane %v488_v56, 2 }
  0x6d   : > { %v661_v52 = vadd.f32 %v660_v45, %v659_v40  ;;  %v831_v54 = vadd.f32 %v830_v49, %v829_v43  ;;  %v1001_v58 = vadd.f32 %v1000_v53, %v999_v46  ;;  %v490_v61 = vadd.f32 %v489_v60, %v488_v56  ;;  %v341_v45 = vld [vmem:[#allocation2 + $0x8] sm:$0xff]  ;;  %v342_v53 = vld [vmem:[#allocation2 + $0x10] sm:$0xff] }
  0x6f   : > { %884 = vrot.lane.b32.xlu1 %v339_v4, %s2162_s7  ;;  %544 = vrot.lane.b32.xlu0 %v339_v4, %s2161_s24  ;;  %v662_v57 = vrot.slane %v661_v52, 1  ;;  %v832_v59 = vrot.slane %v831_v54, 1  ;;  %v1002_v0 = vrot.slane %v1001_v58, 1  ;;  %v491_v3 = vrot.slane %v490_v61, 1 }
  0x71   : > { %v663_v62 = vadd.f32 %v662_v57, %v661_v52  ;;  %v833_v1 = vadd.f32 %v832_v59, %v831_v54  ;;  %v492_v6 = vadd.f32 %v491_v3, %v490_v61 }
  0x73   : > { %882 = vrot.lane.b32.xlu1 %v338_v7, %s2162_s7  ;;  %714 = vrot.lane.b32.xlu0 %v339_v4, %s2160_s18  ;;  %v1966_v4 = vpop.eup %1965  ;;  %v493_v11 = vadd.f32 %v492_v6, %v483_v5 }
  0x74   : > { %v1968_v9 = vpop.eup %1967  ;;  %v2424_v10 = vadd.f32 %v1966_v4, %v1021_v2 }
  0x75   : > { %495 = vst.msk [vmem:[#allocation3] sm:$0x1] %vm494_vm6, %v493_v11 }
  0x77   : > { %846 = vrot.lane.b32.xlu1 %v2359_v13, %s2162_s7  ;;  %712 = vrot.lane.b32.xlu0 %v338_v7, %s2160_s18  ;;  %v1003_v7 = vadd.f32 %v1002_v0, %v1001_v58 }
  0x7c   : > { %v2471_v42 = vld [vmem:[#allocation3] ss:$0 sm:$0xff] }
  0x7d   : > { %v1030_v43 = vmul.f32 %v2471_v42, %v2424_v10 }
  0x7f   : > { %v1032_v44 = vsel %vm307_vm2, %v1030_v43, 0.0 }
  0x95   : > { %344 = vxpose.xlu0.b32.start [1/2] (short) (narrow) %v2353_v12, 32 }
  0x99   : > { %345 = vxpose.xlu0.b32.end [2/2] (short) (narrow) %v2359_v13, 32  ;;  %v2429_v13 = vadd.f32 %v1968_v9, %v1022_v8 }
  0xd5   : > { %v675_v14 = vpop.permute.xlu1 %674  ;;  %v503_v15 = vpop.permute.xlu0 %502 }
  0xd6   : > { %508 = vxpose.xlu1.b32.start [1/2] (short) (narrow) %v503_v15, 32  ;;  %680 = vxpose.xlu0.b32.start [1/2] (short) (narrow) %v675_v14, 32 }
  0xd9   : > { %v845_v16 = vpop.permute.xlu1 %844  ;;  %v505_v17 = vpop.permute.xlu0 %504 }
  0xda   : > { %509 = vxpose.xlu1.b32.end [2/2] (short) (narrow) %v505_v17, 32 }
  0xdd   : > { %v543_v18 = vpop.permute.xlu1 %542  ;;  %v677_v19 = vpop.permute.xlu0 %676 }
  0xde   : > { %681 = vxpose.xlu0.b32.end [2/2] (short) (narrow) %v677_v19, 32 }
  0xe1   : > { %v2377_v20 = vpop.permute.xlu1 %884  ;;  %v545_v21 = vpop.permute.xlu0 %544 }
  0xe2   : > { %1807 = vmatprep.subr.mxu1 %v545_v21 }
  0xe3   : > { %850 = vxpose.xlu1.b32.start [1/2] (short) (narrow) %v845_v16, 32  ;;  %1808 = vmatpush3.msra.mxu1 %v545_v21 }
  0xe4   : > { %1809 = vmatprep.subr.mxu1 %v543_v18 }
  0xe5   : > { %v2379_v22 = vpop.permute.xlu1 %882  ;;  %1810 = vmatpush3.msra.mxu1 %v543_v18  ;;  %v2381_v23 = vpop.permute.xlu0 %714 }
  0xe6   : > { %1827 = vmatprep.subr.mxu1 %v2377_v20  ;;  %1817 = vmatprep.subr.mxu0 %v2381_v23 }
  0xe9   : > { %v847_v24 = vpop.permute.xlu1 %846  ;;  %v713_v63 = vpop.permute.xlu0 %712 }
  0xea   : > { %851 = vxpose.xlu1.b32.end [2/2] (short) (narrow) %v847_v24, 32 }
 0x10f   : > { %665 = vrot.lane.b32.xlu0 %v663_v62, %s2161_s24 }
 0x110   : > { %835 = vrot.lane.b32.xlu1 %v833_v1, %s2160_s18 }
 0x111   : > { %v360_v12 = vpop.trf.xlu0 }
 0x112   : > { %1801 = vmatprep.mubr.msk.f32.mxu0 %vm376_vm5, %v360_v12  ;;  %v497_v12 = vld [vmem:[#allocation2 + $0x28] sm:$0xff] }
 0x113   : > { %1005 = vrot.lane.b32.xlu0 %v1003_v7, %s2162_s7 }
 0x114   : > { %1176 = vrot.lane.b32.xlu1 %v2424_v10, %s2161_s24 }
 0x115   : > { %v361_v14 = vpop.trf.xlu0 }
 0x116   : > { %1802 = vmatmul.mubr.msk.f32.vlgmr.msra.gmra.mxu0 %vm376_vm5, %v361_v14 }
 0x117   : > { %1818 = vmatpush3.msra.mxu0 %v2381_v23  ;;  %1178 = vrot.lane.b32.xlu0 %v2429_v13, %s2161_s24 }
 0x118   : > { %1819 = vmatprep.subr.mxu0 %v713_v63  ;;  %1310 = vrot.lane.b32.xlu1 %v2424_v10, %s2160_s18 }
 0x119   : > { %v362_v15 = vpop.trf.xlu0  ;;  %1820 = vmatpush3.msra.mxu0 %v713_v63 }
 0x11a   : > { %1804 = vmatprep.mubr.msk.f32.mxu0 %vm376_vm5, %v362_v15  ;;  %v496_v15 = vld [vmem:[#allocation2 + $0x20] sm:$0xff] }
 0x11b   : > { %1312 = vrot.lane.b32.xlu0 %v2429_v13, %s2160_s18 }
 0x11c   : > { %1444 = vrot.lane.b32.xlu1 %v2424_v10, %s2162_s7 }
 0x11d   : > { %v363_v16 = vpop.trf.xlu0 }
 0x11e   : > { %1805 = vmatmul.mubr.msk.f32.gmra.mxu0 %vm376_vm5, %v363_v16 }
 0x11f   : > { %1446 = vrot.lane.b32.xlu0 %v2429_v13, %s2162_s7 }
 0x152   : > { %v524_v17 = vpop.trf.xlu1 }
 0x153   : > { %1811 = vmatprep.mubr.msk.f32.mxu1 %vm376_vm5, %v524_v17 }
 0x156   : > { %v525_v18 = vpop.trf.xlu1  ;;  %v696_v19 = vpop.trf.xlu0 }
 0x157   : > { %1812 = vmatmul.mubr.msk.f32.vlgmr.msra.gmra.mxu1 %vm376_vm5, %v525_v18  ;;  %1821 = vmatprep.mubr.msk.f32.mxu0 %vm376_vm5, %v696_v19  ;;  %v671_v18 = vld [vmem:[#allocation2 + $0x48] sm:$0xff] }
 0x158   : > { %1828 = vmatpush3.msra.mxu1 %v2377_v20 }
 0x159   : > { %1829 = vmatprep.subr.mxu1 %v2379_v22 }
 0x15a   : > { %1830 = vmatpush3.msra.mxu1 %v2379_v22  ;;  %v526_v21 = vpop.trf.xlu1  ;;  %v697_v23 = vpop.trf.xlu0 }
 0x15b   : > { %1814 = vmatprep.mubr.msk.f32.mxu1 %vm376_vm5, %v526_v21  ;;  %1822 = vmatmul.mubr.msk.f32.vlgmr.msra.gmra.mxu0 %vm376_vm5, %v697_v23  ;;  %v670_v23 = vld [vmem:[#allocation2 + $0x40] sm:$0xff] }
 0x15e   : > { %v527_v24 = vpop.trf.xlu1  ;;  %v698_v25 = vpop.trf.xlu0 }
 0x15f   : > { %1815 = vmatmul.mubr.msk.f32.gmra.mxu1 %vm376_vm5, %v527_v24  ;;  %1824 = vmatprep.mubr.msk.f32.mxu0 %vm376_vm5, %v698_v25  ;;  %v499_v24 = vld [vmem:[#allocation2 + $0x38] sm:$0xff] }
 0x162   : > { %v866_v26 = vpop.trf.xlu1  ;;  %v699_v27 = vpop.trf.xlu0 }
 0x163   : > { %1825 = vmatmul.mubr.msk.f32.gmra.mxu0 %vm376_vm5, %v699_v27  ;;  %1831 = vmatprep.mubr.msk.f32.mxu1 %vm376_vm5, %v866_v26 }
 0x164   : > { %1845 = vmatprep.mubr.msk.f32.mxu0 %vm307_vm2, %v2424_v10 }
 0x166   : > { %v867_v20 = vpop.trf.xlu1 }
 0x167   : > { %1832 = vmatmul.mubr.msk.f32.vlgmr.msra.gmra.mxu1 %vm376_vm5, %v867_v20  ;;  %v498_v20 = vld [vmem:[#allocation2 + $0x30] sm:$0xff] }
 0x16a   : > { %v868_v22 = vpop.trf.xlu1 }
 0x16b   : > { %1834 = vmatprep.mubr.msk.f32.mxu1 %vm376_vm5, %v868_v22 }
 0x16e   : > { %v869_v28 = vpop.trf.xlu1 }
 0x16f   : > { %1835 = vmatmul.mubr.msk.f32.gmra.mxu1 %vm376_vm5, %v869_v28 }
 0x181   : > { %v666_v31 = vpop.permute.xlu0 %665 }
 0x182   : > { %v668_v32 = vadd.f32 %v666_v31, %v653_v29  ;;  %v836_v33 = vpop.permute.xlu1 %835  ;;  %v673_v29 = vld [vmem:[#allocation2 + $0x58] sm:$0xff] }
 0x183   : > { %v838_v34 = vadd.f32 %v836_v33, %v823_v30 }
 0x184   : > { %669 = vst.msk [vmem:[#allocation3 + $0x1] sm:$0x1] %vm494_vm6, %v668_v32  ;;  %v672_v32 = vld [vmem:[#allocation2 + $0x50] sm:$0xff] }
 0x185   : > { %839 = vst.msk [vmem:[#allocation3 + $0x2] sm:$0x1] %vm494_vm6, %v838_v34  ;;  %v1006_v36 = vpop.permute.xlu0 %1005 }
 0x186   : > { %v1008_v37 = vadd.f32 %v1006_v36, %v993_v35  ;;  %v1177_v38 = vpop.permute.xlu1 %1176  ;;  %v841_v35 = vld [vmem:[#allocation2 + $0x68] sm:$0xff] }
 0x187   : > { %1856 = vmatprep.mubr.msk.f32.mxu1 %vm307_vm2, %v1177_v38  ;;  %v840_v38 = vld [vmem:[#allocation2 + $0x60] sm:$0xff] }
 0x188   : > { %1009 = vst.msk [vmem:[#allocation3 + $0x3] sm:$0x1] %vm494_vm6, %v1008_v37 }
 0x189   : > { %v2480_v62 = vpop.permute.xlu0 %1178 }
 0x18a   : > { %v1311_v61 = vpop.permute.xlu1 %1310 }
 0x18b   : > { %v1731_v39 = vld [vmem:[#allocation3 + $0x1] ss:$0 sm:$0xff] }
 0x18c   : > { %1143 = vrot.lane.b32.xlu1 %v1731_v39, %s2162_s7  ;;  %v1734_v40 = vld [vmem:[#allocation3 + $0x2] ss:$0 sm:$0xff] }
 0x18d   : > { %1277 = vrot.lane.b32.xlu0 %v1734_v40, %s2160_s18  ;;  %v2485_v63 = vpop.permute.xlu0 %1312 }
 0x18e   : > { %v2487_v0 = vpop.permute.xlu1 %1444 }
 0x18f   : > { %v1737_v41 = vld [vmem:[#allocation3 + $0x3] ss:$0 sm:$0xff] }
 0x190   : > { %1411 = vrot.lane.b32.xlu1 %v1737_v41, %s2161_s24 }
 0x191   : > { %v2489_v1 = vpop.permute.xlu0 %1446 }
 0x1ac   : > { %1033 = vadd.xlane.f32.xlu0 %v1032_v44 }
 0x1d6   : > { %v1803_v46 = vpop.f32.mrf.mxu0 }
 0x1d7   : > { %v475_v48 = vadd.f32 %v1803_v46, %v341_v45 }
 0x1d8   : > { %v455_v49 = vpop.f32.mrf.mxu0 }
 0x1d9   : > { %480 = vst.msk [vmem:[#allocation2 + $0x8] sm:$0xff] %vm307_vm2, %v475_v48  ;;  %v474_v50 = vadd.f32 %v455_v49, %v340_v47  ;;  %v843_v47 = vld [vmem:[#allocation2 + $0x78] sm:$0xff] }
 0x1db   : > { %479 = vst.msk [vmem:[#allocation2] sm:$0xff] %vm307_vm2, %v474_v50 }
 0x1de   : > { %v1806_v52 = vpop.f32.mrf.mxu0 }
 0x1df   : > { %v477_v54 = vadd.f32 %v1806_v52, %v343_v51  ;;  %v842_v51 = vld [vmem:[#allocation2 + $0x70] sm:$0xff] }
 0x1e0   : > { %v465_v55 = vpop.f32.mrf.mxu0  ;;  %v1049_v59 = vld [vmem:[#allocation2 + $0x8] sm:$0xff] }
 0x1e1   : > { %482 = vst.msk [vmem:[#allocation2 + $0x18] sm:$0xff] %vm307_vm2, %v477_v54  ;;  %v476_v56 = vadd.f32 %v465_v55, %v342_v53 }
 0x1e2   : > { %v1048_v60 = vld [vmem:[#allocation2] sm:$0xff] }
 0x1e3   : > { %481 = vst.msk [vmem:[#allocation2 + $0x10] sm:$0xff] %vm307_vm2, %v476_v56 }
 0x1e8   : > { %v1051_v57 = vld [vmem:[#allocation2 + $0x18] sm:$0xff] }
 0x1e9   : > { %1837 = vmatprep.subr.mxu0 %v1051_v57 }
 0x1ea   : > { %1838 = vmatpush3.msra.mxu0 %v1051_v57  ;;  %v1050_v58 = vld [vmem:[#allocation2 + $0x10] sm:$0xff]  ;;  %v1031_v57 = vmul.f32 %v2471_v42, %v2429_v13 }
 0x1eb   : > { %1839 = vmatprep.subr.mxu0 %v1050_v58 }
 0x1ec   : > { %1840 = vmatpush3.msra.mxu0 %v1050_v58  ;;  %v1035_v58 = vsel %vm307_vm2, %v1031_v57, 0.0 }
 0x1ed   : > { %1841 = vmatprep.subr.mxu0 %v1049_v59 }
 0x1ee   : > { %1842 = vmatpush3.msra.mxu0 %v1049_v59 }
 0x1ef   : > { %1843 = vmatprep.subr.mxu0 %v1048_v60 }
 0x1f0   : > { %1844 = vmatpush3.msra.mxu0 %v1048_v60 }
 0x1f1   : > { %1846 = vmatmul.mubr.msk.f32.vlgmr.msra.gmra.mxu0 %vm307_vm2, %v2429_v13 }
 0x1f2   : > { %1867 = vmatprep.mubr.msk.f32.mxu0 %vm307_vm2, %v1311_v61 }
 0x1fe   : > { %v1144_v2 = vpop.permute.xlu1 %1143 }
 0x1ff   : > { %v1146_v3 = vmul.f32 %v1144_v2, %v2424_v10  ;;  %v1278_v4 = vpop.permute.xlu0 %1277  ;;  %v1147_v5 = vmul.f32 %v1144_v2, %v2429_v13 }
 0x200   : > { %v1280_v6 = vmul.f32 %v1278_v4, %v2424_v10  ;;  %v1281_v8 = vmul.f32 %v1278_v4, %v2429_v13 }
 0x201   : > { %1150 = vrot.lane.b32.xlu1 %v1146_v3, %s2161_s24 }
 0x202   : > { %v1412_v7 = vpop.permute.xlu1 %1411 }
 0x203   : > { %v1414_v9 = vmul.f32 %v1412_v7, %v2424_v10  ;;  %v1415_v11 = vmul.f32 %v1412_v7, %v2429_v13 }
 0x205   : > { %1152 = vrot.lane.b32.xlu1 %v1147_v5, %s2161_s24 }
 0x209   : > { %1284 = vrot.lane.b32.xlu1 %v1280_v6, %s2160_s18 }
 0x20d   : > { %1286 = vrot.lane.b32.xlu1 %v1281_v8, %s2160_s18 }
 0x211   : > { %1418 = vrot.lane.b32.xlu1 %v1414_v9, %s2162_s7 }
 0x215   : > { %1420 = vrot.lane.b32.xlu1 %v1415_v11, %s2162_s7 }
 0x217   : > { %v1813_v14 = vpop.f32.mrf.mxu1 }
 0x218   : > { %v646_v16 = vadd.f32 %v1813_v14, %v497_v12 }
 0x219   : > { %v626_v17 = vpop.f32.mrf.mxu1 }
 0x21a   : > { %650 = vst.msk [vmem:[#allocation2 + $0x28] sm:$0xff] %vm307_vm2, %v646_v16  ;;  %v645_v19 = vadd.f32 %v626_v17, %v496_v15 }
 0x21b   : > { %v1823_v21 = vpop.f32.mrf.mxu0 }
 0x21c   : > { %649 = vst.msk [vmem:[#allocation2 + $0x20] sm:$0xff] %vm307_vm2, %v645_v19  ;;  %v816_v10 = vadd.f32 %v1823_v21, %v671_v18 }
 0x21d   : > { %v796_v25 = vpop.f32.mrf.mxu0 }
 0x21e   : > { %820 = vst.msk [vmem:[#allocation2 + $0x48] sm:$0xff] %vm307_vm2, %v816_v10  ;;  %v815_v26 = vadd.f32 %v796_v25, %v670_v23 }
 0x21f   : > { %v1816_v27 = vpop.f32.mrf.mxu1 }
 0x220   : > { %v648_v22 = vadd.f32 %v1816_v27, %v499_v24  ;;  %819 = vst.msk [vmem:[#allocation2 + $0x40] sm:$0xff] %vm307_vm2, %v815_v26 }
 0x221   : > { %v636_v28 = vpop.f32.mrf.mxu1  ;;  %v1173_v45 = vld [vmem:[#allocation2 + $0x28] sm:$0xff] }
 0x222   : > { %652 = vst.msk [vmem:[#allocation2 + $0x38] sm:$0xff] %vm307_vm2, %v648_v22  ;;  %v647_v30 = vadd.f32 %v636_v28, %v498_v20 }
 0x223   : > { %v1826_v31 = vpop.f32.mrf.mxu0  ;;  %v1172_v48 = vld [vmem:[#allocation2 + $0x20] sm:$0xff] }
 0x224   : > { %651 = vst.msk [vmem:[#allocation2 + $0x30] sm:$0xff] %vm307_vm2, %v647_v30  ;;  %v818_v33 = vadd.f32 %v1826_v31, %v673_v29 }
 0x225   : > { %v806_v34 = vpop.f32.mrf.mxu0  ;;  %v1307_v52 = vld [vmem:[#allocation2 + $0x48] sm:$0xff] }
 0x226   : > { %822 = vst.msk [vmem:[#allocation2 + $0x58] sm:$0xff] %vm307_vm2, %v818_v33  ;;  %v817_v36 = vadd.f32 %v806_v34, %v672_v32 }
 0x227   : > { %v1833_v37 = vpop.f32.mrf.mxu1  ;;  %v1306_v55 = vld [vmem:[#allocation2 + $0x40] sm:$0xff] }
 0x228   : > { %821 = vst.msk [vmem:[#allocation2 + $0x50] sm:$0xff] %vm307_vm2, %v817_v36  ;;  %v986_v39 = vadd.f32 %v1833_v37, %v841_v35 }
 0x229   : > { %v1175_v40 = vld [vmem:[#allocation2 + $0x38] sm:$0xff]  ;;  %v966_v41 = vpop.f32.mrf.mxu1 }
 0x22a   : > { %1848 = vmatprep.subr.mxu1 %v1175_v40  ;;  %990 = vst.msk [vmem:[#allocation2 + $0x68] sm:$0xff] %vm307_vm2, %v986_v39  ;;  %v985_v43 = vadd.f32 %v966_v41, %v840_v38 }
 0x22b   : > { %1849 = vmatpush3.msra.mxu1 %v1175_v40  ;;  %v1174_v44 = vld [vmem:[#allocation2 + $0x30] sm:$0xff] }
 0x22c   : > { %1850 = vmatprep.subr.mxu1 %v1174_v44  ;;  %989 = vst.msk [vmem:[#allocation2 + $0x60] sm:$0xff] %vm307_vm2, %v985_v43 }
 0x22d   : > { %1851 = vmatpush3.msra.mxu1 %v1174_v44  ;;  %v1309_v46 = vld [vmem:[#allocation2 + $0x58] sm:$0xff] }
 0x22e   : > { %1852 = vmatprep.subr.mxu1 %v1173_v45  ;;  %1859 = vmatprep.subr.mxu0 %v1309_v46 }
 0x22f   : > { %v1836_v49 = vpop.f32.mrf.mxu1  ;;  %1853 = vmatpush3.msra.mxu1 %v1173_v45  ;;  %1860 = vmatpush3.msra.mxu0 %v1309_v46  ;;  %v1308_v50 = vld [vmem:[#allocation2 + $0x50] sm:$0xff] }
 0x230   : > { %v988_v53 = vadd.f32 %v1836_v49, %v843_v47  ;;  %1854 = vmatprep.subr.mxu1 %v1172_v48  ;;  %1861 = vmatprep.subr.mxu0 %v1308_v50 }
 0x231   : > { %v976_v54 = vpop.f32.mrf.mxu1  ;;  %1855 = vmatpush3.msra.mxu1 %v1172_v48  ;;  %1862 = vmatpush3.msra.mxu0 %v1308_v50  ;;  %v1441_v61 = vld [vmem:[#allocation2 + $0x68] sm:$0xff] }
 0x232   : > { %992 = vst.msk [vmem:[#allocation2 + $0x78] sm:$0xff] %vm307_vm2, %v988_v53  ;;  %v987_v56 = vadd.f32 %v976_v54, %v842_v51  ;;  %1857 = vmatmul.mubr.msk.f32.vlgmr.msra.gmra.mxu1 %vm307_vm2, %v2480_v62  ;;  %1863 = vmatprep.subr.mxu0 %v1307_v52 }
 0x233   : > { %1864 = vmatpush3.msra.mxu0 %v1307_v52  ;;  %1878 = vmatprep.mubr.msk.f32.mxu1 %vm307_vm2, %v2487_v0  ;;  %v1440_v13 = vld [vmem:[#allocation2 + $0x60] sm:$0xff] }
 0x234   : > { %991 = vst.msk [vmem:[#allocation2 + $0x70] sm:$0xff] %vm307_vm2, %v987_v56  ;;  %1865 = vmatprep.subr.mxu0 %v1306_v55 }
 0x235   : > { %1866 = vmatpush3.msra.mxu0 %v1306_v55  ;;  %v1034_v9 = vpop.xlane.xlu0 %1033 }
 0x236   : > { %1868 = vmatmul.mubr.msk.f32.vlgmr.msra.gmra.mxu0 %vm307_vm2, %v2485_v63  ;;  %v1038_v11 = vadd.f32 1e-06, %v1034_v9 }
 0x238   : > { %1969 = vrcp.f32 %v1038_v11 }
 0x239   : > { %v1443_v59 = vld [vmem:[#allocation2 + $0x78] sm:$0xff]  ;;  %1036 = vadd.xlane.f32.xlu1 %v1035_v58 }
 0x23a   : > { %1870 = vmatprep.subr.mxu1 %v1443_v59 }
 0x23b   : > { %1871 = vmatpush3.msra.mxu1 %v1443_v59  ;;  %v1442_v60 = vld [vmem:[#allocation2 + $0x70] sm:$0xff] }
 0x23c   : > { %1872 = vmatprep.subr.mxu1 %v1442_v60 }
 0x23d   : > { %1873 = vmatpush3.msra.mxu1 %v1442_v60 }
 0x23e   : > { %1874 = vmatprep.subr.mxu1 %v1441_v61 }
 0x23f   : > { %1875 = vmatpush3.msra.mxu1 %v1441_v61 }
 0x240   : > { %1876 = vmatprep.subr.mxu1 %v1440_v13 }
 0x241   : > { %1877 = vmatpush3.msra.mxu1 %v1440_v13 }
 0x242   : > { %1879 = vmatmul.mubr.msk.f32.vlgmr.msra.gmra.mxu1 %vm307_vm2, %v2489_v1 }
 0x245   : > { %v1970_v12 = vpop.eup %1969 }
 0x246   : > { %v1042_v14 = vmul.f32 %v1970_v12, %v1038_v11 }
 0x248   : > { %v1044_v15 = vsub.f32 2.0, %v1042_v14 }
 0x24a   : > { %v1046_v16 = vmul.f32 %v1970_v12, %v1044_v15 }
 0x273   : > { %v1151_v42 = vpop.permute.xlu1 %1150 }
 0x274   : > { %v1156_v62 = vsel %vm307_vm2, %v1151_v42, 0.0 }
 0x275   : > { %1157 = vadd.xlane.f32.xlu0 %v1156_v62 }
 0x277   : > { %v1153_v63 = vpop.permute.xlu1 %1152 }
 0x278   : > { %v1159_v0 = vsel %vm307_vm2, %v1153_v63, 0.0 }
 0x279   : > { %1160 = vadd.xlane.f32.xlu0 %v1159_v0 }
 0x27b   : > { %v1285_v2 = vpop.permute.xlu1 %1284 }
 0x27c   : > { %v1290_v3 = vsel %vm307_vm2, %v1285_v2, 0.0 }
 0x27d   : > { %1291 = vadd.xlane.f32.xlu1 %v1290_v3 }
 0x27f   : > { %v1287_v4 = vpop.permute.xlu1 %1286 }
 0x280   : > { %v1293_v5 = vsel %vm307_vm2, %v1287_v4, 0.0 }
 0x281   : > { %1294 = vadd.xlane.f32.xlu0 %v1293_v5 }
 0x283   : > { %v1419_v6 = vpop.permute.xlu1 %1418 }
 0x284   : > { %v1424_v1 = vsel %vm307_vm2, %v1419_v6, 0.0 }
 0x285   : > { %1425 = vadd.xlane.f32.xlu1 %v1424_v1 }
 0x287   : > { %v1421_v7 = vpop.permute.xlu1 %1420 }
 0x288   : > { %v1427_v8 = vsel %vm307_vm2, %v1421_v7, 0.0 }
 0x289   : > { %1428 = vadd.xlane.f32.xlu1 %v1427_v8 }
 0x2b1   : > { %v1847_v17 = vpop.f32.mrf.mxu0 }
 0x2b3   : > { %v1124_v18 = vpop.f32.mrf.mxu0 }
 0x2b4   : > { %v1133_v19 = vmul.f32 %v1124_v18, %v1046_v16 }
 0x2b6   : > { %1135 = vst.msk [vmem:[%s2533_s9] sm:$0xff] %vm307_vm2, %v1133_v19 }
 0x2c2   : > { %v1037_v21 = vpop.xlane.xlu1 %1036 }
 0x2c3   : > { %v1039_v23 = vadd.f32 1e-06, %v1037_v21 }
 0x2c5   : > { %1971 = vrcp.f32 %v1039_v23 }
 0x2d2   : > { %v1972_v10 = vpop.eup %1971 }
 0x2d3   : > { %v1043_v24 = vmul.f32 %v1972_v10, %v1039_v23 }
 0x2d5   : > { %v1045_v25 = vsub.f32 2.0, %v1043_v24 }
 0x2d7   : > { %v1047_v26 = vmul.f32 %v1972_v10, %v1045_v25 }
 0x2d9   : > { %v1134_v27 = vmul.f32 %v1847_v17, %v1047_v26 }
 0x2db   : > { %1136 = vst.msk [vmem:[%s2533_s9 + $0x8] sm:$0xff] %vm307_vm2, %v1134_v27 }
 0x2f2   : > { %v1858_v38 = vpop.f32.mrf.mxu1 }
 0x2f4   : > { %v1250_v46 = vpop.f32.mrf.mxu1 }
 0x2f6   : > { %v1869_v52 = vpop.f32.mrf.mxu0 }
 0x2f8   : > { %v1384_v58 = vpop.f32.mrf.mxu0 }
 0x2fe   : > { %v1158_v20 = vpop.xlane.xlu0 %1157 }
 0x2ff   : > { %v1162_v22 = vadd.f32 1e-06, %v1158_v20 }
 0x301   : > { %1973 = vrcp.f32 %v1162_v22 }
 0x302   : > { %v1161_v28 = vpop.xlane.xlu0 %1160  ;;  %v1880_v62 = vpop.f32.mrf.mxu1 }
 0x303   : > { %v1163_v29 = vadd.f32 1e-06, %v1161_v28 }
 0x304   : > { %v1518_v5 = vpop.f32.mrf.mxu1 }
 0x305   : > { %1975 = vrcp.f32 %v1163_v29 }
 0x306   : > { %v1292_v30 = vpop.xlane.xlu1 %1291 }
 0x307   : > { %v1296_v31 = vadd.f32 1e-06, %v1292_v30 }
 0x309   : > { %1977 = vrcp.f32 %v1296_v31 }
 0x30a   : > { %v1295_v32 = vpop.xlane.xlu0 %1294 }
 0x30b   : > { %v1297_v33 = vadd.f32 1e-06, %v1295_v32 }
 0x30d   : > { %1979 = vrcp.f32 %v1297_v33 }
 0x30e   : > { %v1974_v34 = vpop.eup %1973  ;;  %v1426_v35 = vpop.xlane.xlu1 %1425 }
 0x30f   : > { %v1166_v36 = vmul.f32 %v1974_v34, %v1162_v22  ;;  %v1430_v37 = vadd.f32 1e-06, %v1426_v35 }
 0x311   : > { %v1168_v39 = vsub.f32 2.0, %v1166_v36  ;;  %1981 = vrcp.f32 %v1430_v37 }
 0x312   : > { %v1976_v40 = vpop.eup %1975  ;;  %v1429_v41 = vpop.xlane.xlu1 %1428 }
 0x313   : > { %v1170_v43 = vmul.f32 %v1974_v34, %v1168_v39  ;;  %v1167_v44 = vmul.f32 %v1976_v40, %v1163_v29  ;;  %v1431_v45 = vadd.f32 1e-06, %v1429_v41 }
 0x315   : > { %v1169_v47 = vsub.f32 2.0, %v1167_v44  ;;  %1983 = vrcp.f32 %v1431_v45  ;;  %v1259_v48 = vmul.f32 %v1250_v46, %v1170_v43 }
 0x316   : > { %v1978_v49 = vpop.eup %1977 }
 0x317   : > { %v1171_v50 = vmul.f32 %v1976_v40, %v1169_v47  ;;  %v1300_v51 = vmul.f32 %v1978_v49, %v1296_v31  ;;  %1263 = vrot.lane.b32.xlu0 %v1259_v48, %s2162_s7 }
 0x319   : > { %v1302_v53 = vsub.f32 2.0, %v1300_v51  ;;  %v1260_v54 = vmul.f32 %v1858_v38, %v1171_v50 }
 0x31a   : > { %v1980_v55 = vpop.eup %1979 }
 0x31b   : > { %v1304_v56 = vmul.f32 %v1978_v49, %v1302_v53  ;;  %v1301_v57 = vmul.f32 %v1980_v55, %v1297_v33  ;;  %1265 = vrot.lane.b32.xlu1 %v1260_v54, %s2162_s7 }
 0x31d   : > { %v1303_v59 = vsub.f32 2.0, %v1301_v57  ;;  %v1393_v60 = vmul.f32 %v1384_v58, %v1304_v56 }
 0x31e   : > { %v1982_v61 = vpop.eup %1981 }
 0x31f   : > { %v1305_v13 = vmul.f32 %v1980_v55, %v1303_v59  ;;  %v1434_v42 = vmul.f32 %v1982_v61, %v1430_v37  ;;  %1397 = vrot.lane.b32.xlu1 %v1393_v60, %s2160_s18 }
 0x321   : > { %v1436_v63 = vsub.f32 2.0, %v1434_v42  ;;  %v1394_v0 = vmul.f32 %v1869_v52, %v1305_v13 }
 0x322   : > { %v1984_v2 = vpop.eup %1983 }
 0x323   : > { %v1438_v3 = vmul.f32 %v1982_v61, %v1436_v63  ;;  %v1435_v4 = vmul.f32 %v1984_v2, %v1431_v45  ;;  %1399 = vrot.lane.b32.xlu0 %v1394_v0, %s2160_s18 }
 0x325   : > { %v1437_v6 = vsub.f32 2.0, %v1435_v4  ;;  %v1527_v1 = vmul.f32 %v1518_v5, %v1438_v3 }
 0x327   : > { %v1439_v7 = vmul.f32 %v1984_v2, %v1437_v6  ;;  %1531 = vrot.lane.b32.xlu1 %v1527_v1, %s2161_s24 }
 0x329   : > { %v1528_v8 = vmul.f32 %v1880_v62, %v1439_v7 }
 0x32b   : > { %1533 = vrot.lane.b32.xlu1 %v1528_v8, %s2161_s24 }
 0x389   : > { %v1264_v9 = vpop.permute.xlu0 %1263 }
 0x38a   : > { %1269 = vst.msk [vmem:[%s2533_s9] sm:$0xff] %vm654_vm0, %v1264_v9 }
 0x38d   : > { %v1266_v11 = vpop.permute.xlu1 %1265 }
 0x38e   : > { %1270 = vst.msk [vmem:[%s2533_s9 + $0x8] sm:$0xff] %vm654_vm0, %v1266_v11 }
 0x391   : > { %v1398_v12 = vpop.permute.xlu1 %1397 }
 0x392   : > { %1403 = vst.msk [vmem:[%s2533_s9] sm:$0xff] %vm824_vm1, %v1398_v12 }
 0x395   : > { %v1400_v14 = vpop.permute.xlu0 %1399 }
 0x396   : > { %1404 = vst.msk [vmem:[%s2533_s9 + $0x8] sm:$0xff] %vm824_vm1, %v1400_v14 }
 0x399   : > { %v1532_v15 = vpop.permute.xlu1 %1531 }
 0x39a   : > { %1537 = vst.msk [vmem:[%s2533_s9] sm:$0xff] %vm994_vm4, %v1532_v15 }
 0x39d   : > { %v1534_v16 = vpop.permute.xlu1 %1533 }
 0x39e   : > { %1538 = vst.msk [vmem:[%s2533_s9 + $0x8] sm:$0xff] %vm994_vm4, %v1534_v16 }
 0x39f   : > { %2082 = shalt.err (!%p2079_p12)
}
 0x3a0   : > { %s2083_s4 = scalar_lea.hbm %s2560_s6, 256  ;;  %s2087_s20 = scalar_lea.hbm %s2615_s3, 512 }
 0x3a1   : > { %p2084_p1 = scmp.ne.s32.totalorder %s2560_s6, %s2083_s4  ;;  %p2088_p6 = scmp.lt.s32.totalorder %s2560_s6, %s2615_s3 }
 0x3a2   : > { %p2089_p7 = scmp.lt.s32.totalorder %s2087_s20, %s2083_s4 }
 0x3a3   : > { %p2085_p2 = pnand %p2084_p1, %p2242_p9 }
 0x3a4   : > { %p2090_p8 = por %p2089_p7, %p2088_p6 }
 0x3a5   : > { %p2086_p5 = pneg %p2085_p2 }
 0x3a7   : > { %p2091_p0 = pnand %p2090_p8, %p2086_p5 }
 0x3a9   : > { %2094 = shalt.err (!%p2091_p0)
}
 0x3aa   : > { %s2165_s5 = smov 128   ;;  %s2166_s18 = smov 8  }
 0x3ab   : > { %1887 = dma.vmem_to_hbm [thread:$0]  (%p2242_p9), %s2562_s16, 256, %s2560_s6, %s1540_s22, %s2165_s5, %s2165_s5, %s2166_s18  }
 0x3ac PF: > { %s1570_s24 = sand.u32 1, %s2133_s12   ;;  %p2634_p3 = scmp.ge.s32.totalorder %s2153_s17, 2 }
 0x3ad   : > { %s1571_s7 = scalar_lea.sflag [#allocation6], %s1570_s24 }
 0x3ae   : > { %p1900_p4 = pnand %p2634_p3, %p2249_p11 }
 0x3b0   : > { %p1901_p10 = pneg %p1900_p4 }
 0x3b2   : > { %2128 = dma.done.wait (%p1901_p10), %s1571_s7, 256  }
 0x3b3   : > { %2130 = vsyncadd (%p1901_p10), %s1571_s7, 4294967040  ;;  %s22_s17 = sadd.s32 1, %s2153_s17   ;;  %s2635_s25 = sld [smem:[#allocation16_spill]] }
 0x3b4   : > { %p19_p13 = scmp.ge.s32.totalorder %s22_s17, 4   ;;  %s2636_s15 = sld [smem:[#allocation14_spill]] }
 0x3b5   : > { %s2637_s16 = sld [smem:[#allocation15_spill]]  ;;  %s2638_s12 = smov %s2137_s13 }
 0x3b6   : > { %s2639_s13 = smov %s2141_s14  ;;  %21 = sbr.rel (!%p19_p13) target bundleno = 10 (0xa), region = 109 }
 0x3b9   : > { %s2640_s14 = smov %s2635_s25 }
 0x3bb   :  { %1576 = vsyncpa [#allocation5], 1 }
 0x3bc   :  { %1578 = vsyncpa [#allocation5 + $0x1], 1 }
 0x3bd   :  { %1579 = vsyncpa [#allocation8], 1 }
 0x3be   :  { %1581 = vsyncpa [#allocation8 + $0x1], 1 }
 0x3bf   :  { %1582 = vsyncpa [#allocation6], 1 }
 0x3c0   :  { %1584 = vsyncpa [#allocation6 + $0x1], 1 }

</bundles_post_ra>
